<compile_context>
chip_gen: v7x
topology: tpu7x:2x2x1
jax: 0.10.0
libtpu: 0.0.40
codegen_flags: <defaults>
</compile_context>

<pallas_src>
from functools import partial

import jax
import jax.numpy as jnp
from jax import lax
from jax.experimental import pallas as pl
from jax.experimental.pallas import tpu as pltpu


def _mlp_kernel(num_layers, chunks_per_tile, hidden_on_mxu, *refs):
    """Fused MLP forward over one batch tile, chunked along the lane axis.

    refs = (x_ref, w0, b0, w1, b1, ..., w_{L-1}, b_{L-1}, o_ref)

    Kernel-side parameter layout:
      x_ref / o_ref      : (chunks_per_tile, 1, chunk)   chunk = lane-chunk (mult of 128)
      layer 0            : w (h0, 1) f32,  b (h0, 1) f32   -> VPU outer product
      layers 1 .. L-2    : w (hout, hin),  b (hout, 1) f32 -> MXU (w may be bf16) or VPU FMA
      layer L-1 (output) : w (hlast, 1) f32, b (1, 1) f32  -> VPU mul + sublane reduce
    Only the output layer skips tanh (matches MLPModel.forward).
    """
    x_ref = refs[0]
    o_ref = refs[-1]
    p = refs[1:-1]

    def one_chunk(c, carry):
        x = x_ref[c]                                     # (1, chunk), lane-dense

        # ---- Layer 0: in_features == 1 -> outer product on the VPU. ----
        w0 = p[0][...]                                   # (h0, 1)
        b0 = p[1][...]                                   # (h0, 1)
        h = jnp.tanh(w0 * x + b0)                        # (h0, chunk)

        # ---- Hidden -> hidden layers. ----
        for layer in range(1, num_layers - 1):
            w = p[2 * layer][...]                        # (hout, hin)
            b = p[2 * layer + 1][...]                    # (hout, 1), f32
            if hidden_on_mxu[layer - 1]:
                # MXU path: inputs may be bf16 (weights pre-cast host-side),
                # accumulation is always f32.
                z = jnp.dot(w, h.astype(w.dtype),
                            preferred_element_type=jnp.float32) + b
            else:
                # Small-dim path: f32 broadcast-FMA on the VPU (no MXU,
                # overlaps with tanh on the EUP slot).
                hin = w.shape[1]
                z = w[:, 0:1] * h[0:1, :] + b            # (hout, chunk)
                for i in range(1, hin):
                    z = z + w[:, i:i + 1] * h[i:i + 1, :]
            h = jnp.tanh(z)

        # ---- Output layer: out_features == 1 -> mul + sublane reduce. ----
        wl = p[2 * (num_layers - 1)][...]                # (hlast, 1)
        bl = p[2 * (num_layers - 1) + 1][...]            # (1, 1)
        out = jnp.sum(wl * h, axis=0, keepdims=True) + bl   # (1, chunk)
        o_ref[c] = out.astype(o_ref.dtype)
        return carry

    # fori_loop (not a static Python for) bounds vreg live ranges per chunk.
    lax.fori_loop(0, chunks_per_tile, one_chunk, 0)


def mlp_forward(x, params, *, batch_tile=4096, lane_chunk=512,
                mxu_input_dtype=jnp.bfloat16,
                vmem_limit_bytes=48 * 1024 * 1024):
    """Run the fused MLP Pallas kernel.

    x      : any shape; flattened to N scalar samples (torch's x.view(-1, 1))
    params : list of (W, b) with W (in_features, out_features), b (1, out_features).
             NOTE: torch.nn.Linear stores weight as (out, in); transpose when
             importing real PyTorch weights.
    batch_tile       : samples per grid step (multiple of 128; 2048-8192 recommended)
    lane_chunk       : in-kernel chunk width in lanes (multiple of 128; 256-512)
    mxu_input_dtype  : dtype fed to the MXU for hidden layers >= 128 wide
                       (bf16 default for v6e/v7x; use jnp.float32 on v5e / exact f32)
    returns: (N, 1) float32
    """
    x_flat = jnp.ravel(x).astype(jnp.float32)
    n = x_flat.shape[0]
    num_layers = len(params)
    assert num_layers >= 2, "need at least one hidden layer"
    assert params[0][0].shape[0] == 1, "input layer must have in_features == 1"
    assert params[-1][0].shape[1] == 1, "output layer must have out_features == 1"

    batch_tile = int(batch_tile)
    lane_chunk = int(lane_chunk)
    assert batch_tile > 0 and batch_tile % 128 == 0, "batch_tile must be a multiple of 128"
    assert lane_chunk > 0 and lane_chunk % 128 == 0, "lane_chunk must be a multiple of 128"

    # ---- Choose (tile, steps): large tiles amortize per-step overhead; even
    #      step count keeps both v7x TensorCores busy. ----
    if n <= 128:
        tile, steps = 128, 1
    else:
        steps = max(2, pl.cdiv(n, batch_tile))
        steps += steps % 2                                  # even grid for v7x megacore
        tile = pl.cdiv(pl.cdiv(n, steps), 128) * 128
        tile = max(128, min(tile, batch_tile))
    chunk = min(lane_chunk, tile)
    if tile % chunk != 0:
        chunk = 128                                         # 128 always divides tile
    chunks_per_tile = tile // chunk
    total_chunks = steps * chunks_per_tile
    n_pad = steps * tile

    if n_pad != n:
        x_flat = jnp.pad(x_flat, (0, n_pad - n))
    # Chunk index on a leading (untiled) dim so the in-kernel loop uses cheap
    # dynamic leading-dim indexing; batch stays on the lane axis of each chunk.
    x3 = x_flat.reshape(total_chunks, 1, chunk)

    # ---- Re-lay-out parameters for the kernel (features on sublanes). ----
    kparams = []
    hidden_on_mxu = []
    for i, (w, b) in enumerate(params):
        w = jnp.asarray(w, jnp.float32)
        b = jnp.asarray(b, jnp.float32)
        if i == 0:
            kparams.extend([w.T, b.T])                       # (h0, 1), (h0, 1)
        elif i == num_layers - 1:
            kparams.extend([w, b])                           # (hlast, 1), (1, 1)
        else:
            hin, hout = w.shape
            on_mxu = max(hin, hout) >= 128
            hidden_on_mxu.append(on_mxu)
            wk = w.T                                         # (hout, hin)
            if on_mxu:
                wk = wk.astype(mxu_input_dtype)              # pre-cast host-side
            kparams.extend([wk, b.T])                        # weight, bias (hout, 1)
    hidden_on_mxu = tuple(hidden_on_mxu)

    grid = (steps,)
    io_block = (chunks_per_tile, 1, chunk)

    in_specs = [pl.BlockSpec(io_block, lambda i: (i, 0, 0))]
    for kp in kparams:
        # Small params: one full-array block, constant index_map -> VMEM-resident
        # across all grid steps.  Single-buffer large weights to halve their VMEM.
        if kp.size * kp.dtype.itemsize >= (1 << 20):
            spec = pl.BlockSpec(kp.shape, lambda i: (0, 0),
                                pipeline_mode=pl.Buffered(1))
        else:
            spec = pl.BlockSpec(kp.shape, lambda i: (0, 0))
        in_specs.append(spec)
    out_spec = pl.BlockSpec(io_block, lambda i: (i, 0, 0))

    out = pl.pallas_call(
        partial(_mlp_kernel, num_layers, chunks_per_tile, hidden_on_mxu),
        out_shape=jax.ShapeDtypeStruct((total_chunks, 1, chunk), jnp.float32),
        grid_spec=pltpu.PrefetchScalarGridSpec(
            num_scalar_prefetch=0,
            grid=grid,
            in_specs=in_specs,
            out_specs=out_spec,
        ),
        compiler_params=pltpu.CompilerParams(
            dimension_semantics=("parallel",),
            vmem_limit_bytes=int(vmem_limit_bytes),
        ),
    )(x3, *kparams)

    return out.reshape(n_pad, 1)[:n]


def init_mlp_params(key, hidden_sizes):
    """Deterministic init mirroring torch.nn.Linear (uniform +/- 1/sqrt(fan_in)).

    Layer dims: 1 -> hidden_sizes[0] -> ... -> hidden_sizes[-1] -> 1.
    Returned layout: W (in_features, out_features), b (1, out_features).
    """
    dims = [1] + list(hidden_sizes) + [1]
    params = []
    for in_dim, out_dim in zip(dims[:-1], dims[1:]):
        key, kw, kb = jax.random.split(key, 3)
        bound = 1.0 / jnp.sqrt(jnp.float32(in_dim))
        w = jax.random.uniform(kw, (in_dim, out_dim), jnp.float32, -bound, bound)
        b = jax.random.uniform(kb, (1, out_dim), jnp.float32, -bound, bound)
        params.append((w, b))
    return params


def mlp_reference(x, params):
    h = x
    for i, (w, b) in enumerate(params):
        h = h @ w + b
        if i != len(params) - 1:
            h = jnp.tanh(h)
    return h


if __name__ == "__main__":
    key = jax.random.PRNGKey(0)
    k_p1, k_p2, k_x1, k_x2 = jax.random.split(key, 4)

    # --- Test 1: tiny hidden dims (32) -> pure-VPU hidden layer, chunked tile,
    #     even grid (2 steps x 1024 samples, 4 chunks of 256 lanes each). ---
    hidden_sizes = [32, 32]
    params = init_mlp_params(k_p1, hidden_sizes)
    x_raw = jax.random.normal(k_x1, (2048,), jnp.float32)
    out = jax.block_until_ready(
        mlp_forward(x_raw, params, batch_tile=1024, lane_chunk=256))
    ref = mlp_reference(x_raw.reshape(-1, 1), params)
    assert out.shape == (2048, 1)
    assert jnp.allclose(out, ref, atol=1e-5, rtol=1e-5), "VPU-path mismatch vs reference"

    # --- Test 2: hidden >= 128 -> MXU path with f32 inputs (tight check). ---
    hidden_sizes2 = [128, 128]
    params2 = init_mlp_params(k_p2, hidden_sizes2)
    x_raw2 = jax.random.normal(k_x2, (512,), jnp.float32)
    out2 = jax.block_until_ready(
        mlp_forward(x_raw2, params2, batch_tile=256, lane_chunk=256,
                    mxu_input_dtype=jnp.float32))
    ref2 = mlp_reference(x_raw2.reshape(-1, 1), params2)
    assert out2.shape == (512, 1)
    assert jnp.allclose(out2, ref2, atol=1e-4, rtol=1e-4), "MXU f32 mismatch vs reference"

    # --- Test 3: MXU path with default bf16 inputs / f32 accumulation
    #     (v6e / v7x recommendation); loose tolerance due to bf16 rounding. ---
    out3 = jax.block_until_ready(
        mlp_forward(x_raw2, params2, batch_tile=256, lane_chunk=256))
    assert jnp.allclose(out3, ref2, atol=5e-2, rtol=5e-2), "MXU bf16 mismatch vs reference"

    print("KERNEL_OK")
</pallas_src>

<mosaic_0001>
module attributes {stable_mosaic.version = 11 : i64} {
  func.func @_mlp_kernel(%arg0: i32, %arg1: memref<4x1x256xf32, #tpu.memory_space<vmem>>, %arg2: memref<32x1xf32, #tpu.memory_space<vmem>>, %arg3: memref<32x1xf32, #tpu.memory_space<vmem>>, %arg4: memref<32x32xf32, #tpu.memory_space<vmem>>, %arg5: memref<32x1xf32, #tpu.memory_space<vmem>>, %arg6: memref<32x1xf32, #tpu.memory_space<vmem>>, %arg7: memref<1x1xf32, #tpu.memory_space<vmem>>, %arg8: memref<4x1x256xf32, #tpu.memory_space<vmem>>) attributes {dimension_semantics = [#tpu.dimension_semantics<parallel>], iteration_bounds = array<i64: 2>, scalar_prefetch = 0 : i64, scratch_operands = 0 : i64, tpu.core_type = #tpu.core_type<tc>, window_params = [{transform_indices = @transform_0, window_bounds = array<i64: 4, 1, 256>}, {pipeline_mode = #tpu.pipeline_mode<synchronous>, transform_indices = @transform_1, window_bounds = array<i64: 32, 1>}, {pipeline_mode = #tpu.pipeline_mode<synchronous>, transform_indices = @transform_2, window_bounds = array<i64: 32, 1>}, {pipeline_mode = #tpu.pipeline_mode<synchronous>, transform_indices = @transform_3, window_bounds = array<i64: 32, 32>}, {pipeline_mode = #tpu.pipeline_mode<synchronous>, transform_indices = @transform_4, window_bounds = array<i64: 32, 1>}, {pipeline_mode = #tpu.pipeline_mode<synchronous>, transform_indices = @transform_5, window_bounds = array<i64: 32, 1>}, {pipeline_mode = #tpu.pipeline_mode<synchronous>, transform_indices = @transform_6, window_bounds = array<i64: 1, 1>}, {transform_indices = @transform_7, window_bounds = array<i64: 4, 1, 256>}]} {
    %c0_i32 = arith.constant 0 : i32
    %c4_i32 = arith.constant 4 : i32
    %0 = arith.addi %c0_i32, %c4_i32 : i32
    %c1_i32 = arith.constant 1 : i32
    scf.for %arg9 = %c0_i32 to %0 step %c1_i32  : i32 {
      %1 = arith.index_cast %arg9 : i32 to index
      %c0 = arith.constant 0 : index
      %c0_1 = arith.constant 0 : index
      %2 = vector.load %arg1[%1, %c0, %c0_1] : memref<4x1x256xf32, #tpu.memory_space<vmem>>, vector<1x1x256xf32>
      %3 = vector.shape_cast %2 : vector<1x1x256xf32> to vector<1x256xf32>
      %c0_2 = arith.constant 0 : index
      %c0_3 = arith.constant 0 : index
      %4 = vector.load %arg2[%c0_2, %c0_3] : memref<32x1xf32, #tpu.memory_space<vmem>>, vector<32x1xf32>
      %c0_4 = arith.constant 0 : index
      %c0_5 = arith.constant 0 : index
      %5 = vector.load %arg3[%c0_4, %c0_5] : memref<32x1xf32, #tpu.memory_space<vmem>>, vector<32x1xf32>
      %6 = vector.broadcast %4 : vector<32x1xf32> to vector<32x256xf32>
      %7 = vector.broadcast %3 : vector<1x256xf32> to vector<32x256xf32>
      %8 = arith.mulf %6, %7 : vector<32x256xf32>
      %9 = vector.broadcast %5 : vector<32x1xf32> to vector<32x256xf32>
      %10 = arith.addf %8, %9 : vector<32x256xf32>
      %11 = math.tanh %10 : vector<32x256xf32>
      %c0_6 = arith.constant 0 : index
      %c0_7 = arith.constant 0 : index
      %12 = vector.load %arg4[%c0_6, %c0_7] : memref<32x32xf32, #tpu.memory_space<vmem>>, vector<32x32xf32>
      %c0_8 = arith.constant 0 : index
      %c0_9 = arith.constant 0 : index
      %13 = vector.load %arg5[%c0_8, %c0_9] : memref<32x1xf32, #tpu.memory_space<vmem>>, vector<32x1xf32>
      %14 = vector.extract_strided_slice %12 {offsets = [0, 0], sizes = [32, 1], strides = [1, 1]} : vector<32x32xf32> to vector<32x1xf32>
      %15 = vector.extract_strided_slice %11 {offsets = [0, 0], sizes = [1, 256], strides = [1, 1]} : vector<32x256xf32> to vector<1x256xf32>
      %16 = vector.broadcast %14 : vector<32x1xf32> to vector<32x256xf32>
      %17 = vector.broadcast %15 : vector<1x256xf32> to vector<32x256xf32>
      %18 = arith.mulf %16, %17 : vector<32x256xf32>
      %19 = vector.broadcast %13 : vector<32x1xf32> to vector<32x256xf32>
      %20 = arith.addf %18, %19 : vector<32x256xf32>
      %21 = vector.extract_strided_slice %12 {offsets = [0, 1], sizes = [32, 1], strides = [1, 1]} : vector<32x32xf32> to vector<32x1xf32>
      %22 = vector.extract_strided_slice %11 {offsets = [1, 0], sizes = [1, 256], strides = [1, 1]} : vector<32x256xf32> to vector<1x256xf32>
      %23 = vector.broadcast %21 : vector<32x1xf32> to vector<32x256xf32>
      %24 = vector.broadcast %22 : vector<1x256xf32> to vector<32x256xf32>
      %25 = arith.mulf %23, %24 : vector<32x256xf32>
      %26 = arith.addf %20, %25 : vector<32x256xf32>
      %27 = vector.extract_strided_slice %12 {offsets = [0, 2], sizes = [32, 1], strides = [1, 1]} : vector<32x32xf32> to vector<32x1xf32>
      %28 = vector.extract_strided_slice %11 {offsets = [2, 0], sizes = [1, 256], strides = [1, 1]} : vector<32x256xf32> to vector<1x256xf32>
      %29 = vector.broadcast %27 : vector<32x1xf32> to vector<32x256xf32>
      %30 = vector.broadcast %28 : vector<1x256xf32> to vector<32x256xf32>
      %31 = arith.mulf %29, %30 : vector<32x256xf32>
      %32 = arith.addf %26, %31 : vector<32x256xf32>
      %33 = vector.extract_strided_slice %12 {offsets = [0, 3], sizes = [32, 1], strides = [1, 1]} : vector<32x32xf32> to vector<32x1xf32>
      %34 = vector.extract_strided_slice %11 {offsets = [3, 0], sizes = [1, 256], strides = [1, 1]} : vector<32x256xf32> to vector<1x256xf32>
      %35 = vector.broadcast %33 : vector<32x1xf32> to vector<32x256xf32>
      %36 = vector.broadcast %34 : vector<1x256xf32> to vector<32x256xf32>
      %37 = arith.mulf %35, %36 : vector<32x256xf32>
      %38 = arith.addf %32, %37 : vector<32x256xf32>
      %39 = vector.extract_strided_slice %12 {offsets = [0, 4], sizes = [32, 1], strides = [1, 1]} : vector<32x32xf32> to vector<32x1xf32>
      %40 = vector.extract_strided_slice %11 {offsets = [4, 0], sizes = [1, 256], strides = [1, 1]} : vector<32x256xf32> to vector<1x256xf32>
      %41 = vector.broadcast %39 : vector<32x1xf32> to vector<32x256xf32>
      %42 = vector.broadcast %40 : vector<1x256xf32> to vector<32x256xf32>
      %43 = arith.mulf %41, %42 : vector<32x256xf32>
      %44 = arith.addf %38, %43 : vector<32x256xf32>
      %45 = vector.extract_strided_slice %12 {offsets = [0, 5], sizes = [32, 1], strides = [1, 1]} : vector<32x32xf32> to vector<32x1xf32>
      %46 = vector.extract_strided_slice %11 {offsets = [5, 0], sizes = [1, 256], strides = [1, 1]} : vector<32x256xf32> to vector<1x256xf32>
      %47 = vector.broadcast %45 : vector<32x1xf32> to vector<32x256xf32>
      %48 = vector.broadcast %46 : vector<1x256xf32> to vector<32x256xf32>
      %49 = arith.mulf %47, %48 : vector<32x256xf32>
      %50 = arith.addf %44, %49 : vector<32x256xf32>
      %51 = vector.extract_strided_slice %12 {offsets = [0, 6], sizes = [32, 1], strides = [1, 1]} : vector<32x32xf32> to vector<32x1xf32>
      %52 = vector.extract_strided_slice %11 {offsets = [6, 0], sizes = [1, 256], strides = [1, 1]} : vector<32x256xf32> to vector<1x256xf32>
      %53 = vector.broadcast %51 : vector<32x1xf32> to vector<32x256xf32>
      %54 = vector.broadcast %52 : vector<1x256xf32> to vector<32x256xf32>
      %55 = arith.mulf %53, %54 : vector<32x256xf32>
      %56 = arith.addf %50, %55 : vector<32x256xf32>
      %57 = vector.extract_strided_slice %12 {offsets = [0, 7], sizes = [32, 1], strides = [1, 1]} : vector<32x32xf32> to vector<32x1xf32>
      %58 = vector.extract_strided_slice %11 {offsets = [7, 0], sizes = [1, 256], strides = [1, 1]} : vector<32x256xf32> to vector<1x256xf32>
      %59 = vector.broadcast %57 : vector<32x1xf32> to vector<32x256xf32>
      %60 = vector.broadcast %58 : vector<1x256xf32> to vector<32x256xf32>
      %61 = arith.mulf %59, %60 : vector<32x256xf32>
      %62 = arith.addf %56, %61 : vector<32x256xf32>
      %63 = vector.extract_strided_slice %12 {offsets = [0, 8], sizes = [32, 1], strides = [1, 1]} : vector<32x32xf32> to vector<32x1xf32>
      %64 = vector.extract_strided_slice %11 {offsets = [8, 0], sizes = [1, 256], strides = [1, 1]} : vector<32x256xf32> to vector<1x256xf32>
      %65 = vector.broadcast %63 : vector<32x1xf32> to vector<32x256xf32>
      %66 = vector.broadcast %64 : vector<1x256xf32> to vector<32x256xf32>
      %67 = arith.mulf %65, %66 : vector<32x256xf32>
      %68 = arith.addf %62, %67 : vector<32x256xf32>
      %69 = vector.extract_strided_slice %12 {offsets = [0, 9], sizes = [32, 1], strides = [1, 1]} : vector<32x32xf32> to vector<32x1xf32>
      %70 = vector.extract_strided_slice %11 {offsets = [9, 0], sizes = [1, 256], strides = [1, 1]} : vector<32x256xf32> to vector<1x256xf32>
      %71 = vector.broadcast %69 : vector<32x1xf32> to vector<32x256xf32>
      %72 = vector.broadcast %70 : vector<1x256xf32> to vector<32x256xf32>
      %73 = arith.mulf %71, %72 : vector<32x256xf32>
      %74 = arith.addf %68, %73 : vector<32x256xf32>
      %75 = vector.extract_strided_slice %12 {offsets = [0, 10], sizes = [32, 1], strides = [1, 1]} : vector<32x32xf32> to vector<32x1xf32>
      %76 = vector.extract_strided_slice %11 {offsets = [10, 0], sizes = [1, 256], strides = [1, 1]} : vector<32x256xf32> to vector<1x256xf32>
      %77 = vector.broadcast %75 : vector<32x1xf32> to vector<32x256xf32>
      %78 = vector.broadcast %76 : vector<1x256xf32> to vector<32x256xf32>
      %79 = arith.mulf %77, %78 : vector<32x256xf32>
      %80 = arith.addf %74, %79 : vector<32x256xf32>
      %81 = vector.extract_strided_slice %12 {offsets = [0, 11], sizes = [32, 1], strides = [1, 1]} : vector<32x32xf32> to vector<32x1xf32>
      %82 = vector.extract_strided_slice %11 {offsets = [11, 0], sizes = [1, 256], strides = [1, 1]} : vector<32x256xf32> to vector<1x256xf32>
      %83 = vector.broadcast %81 : vector<32x1xf32> to vector<32x256xf32>
      %84 = vector.broadcast %82 : vector<1x256xf32> to vector<32x256xf32>
      %85 = arith.mulf %83, %84 : vector<32x256xf32>
      %86 = arith.addf %80, %85 : vector<32x256xf32>
      %87 = vector.extract_strided_slice %12 {offsets = [0, 12], sizes = [32, 1], strides = [1, 1]} : vector<32x32xf32> to vector<32x1xf32>
      %88 = vector.extract_strided_slice %11 {offsets = [12, 0], sizes = [1, 256], strides = [1, 1]} : vector<32x256xf32> to vector<1x256xf32>
      %89 = vector.broadcast %87 : vector<32x1xf32> to vector<32x256xf32>
      %90 = vector.broadcast %88 : vector<1x256xf32> to vector<32x256xf32>
      %91 = arith.mulf %89, %90 : vector<32x256xf32>
      %92 = arith.addf %86, %91 : vector<32x256xf32>
      %93 = vector.extract_strided_slice %12 {offsets = [0, 13], sizes = [32, 1], strides = [1, 1]} : vector<32x32xf32> to vector<32x1xf32>
      %94 = vector.extract_strided_slice %11 {offsets = [13, 0], sizes = [1, 256], strides = [1, 1]} : vector<32x256xf32> to vector<1x256xf32>
      %95 = vector.broadcast %93 : vector<32x1xf32> to vector<32x256xf32>
      %96 = vector.broadcast %94 : vector<1x256xf32> to vector<32x256xf32>
      %97 = arith.mulf %95, %96 : vector<32x256xf32>
      %98 = arith.addf %92, %97 : vector<32x256xf32>
      %99 = vector.extract_strided_slice %12 {offsets = [0, 14], sizes = [32, 1], strides = [1, 1]} : vector<32x32xf32> to vector<32x1xf32>
      %100 = vector.extract_strided_slice %11 {offsets = [14, 0], sizes = [1, 256], strides = [1, 1]} : vector<32x256xf32> to vector<1x256xf32>
      %101 = vector.broadcast %99 : vector<32x1xf32> to vector<32x256xf32>
      %102 = vector.broadcast %100 : vector<1x256xf32> to vector<32x256xf32>
      %103 = arith.mulf %101, %102 : vector<32x256xf32>
      %104 = arith.addf %98, %103 : vector<32x256xf32>
      %105 = vector.extract_strided_slice %12 {offsets = [0, 15], sizes = [32, 1], strides = [1, 1]} : vector<32x32xf32> to vector<32x1xf32>
      %106 = vector.extract_strided_slice %11 {offsets = [15, 0], sizes = [1, 256], strides = [1, 1]} : vector<32x256xf32> to vector<1x256xf32>
      %107 = vector.broadcast %105 : vector<32x1xf32> to vector<32x256xf32>
      %108 = vector.broadcast %106 : vector<1x256xf32> to vector<32x256xf32>
      %109 = arith.mulf %107, %108 : vector<32x256xf32>
      %110 = arith.addf %104, %109 : vector<32x256xf32>
      %111 = vector.extract_strided_slice %12 {offsets = [0, 16], sizes = [32, 1], strides = [1, 1]} : vector<32x32xf32> to vector<32x1xf32>
      %112 = vector.extract_strided_slice %11 {offsets = [16, 0], sizes = [1, 256], strides = [1, 1]} : vector<32x256xf32> to vector<1x256xf32>
      %113 = vector.broadcast %111 : vector<32x1xf32> to vector<32x256xf32>
      %114 = vector.broadcast %112 : vector<1x256xf32> to vector<32x256xf32>
      %115 = arith.mulf %113, %114 : vector<32x256xf32>
      %116 = arith.addf %110, %115 : vector<32x256xf32>
      %117 = vector.extract_strided_slice %12 {offsets = [0, 17], sizes = [32, 1], strides = [1, 1]} : vector<32x32xf32> to vector<32x1xf32>
      %118 = vector.extract_strided_slice %11 {offsets = [17, 0], sizes = [1, 256], strides = [1, 1]} : vector<32x256xf32> to vector<1x256xf32>
      %119 = vector.broadcast %117 : vector<32x1xf32> to vector<32x256xf32>
      %120 = vector.broadcast %118 : vector<1x256xf32> to vector<32x256xf32>
      %121 = arith.mulf %119, %120 : vector<32x256xf32>
      %122 = arith.addf %116, %121 : vector<32x256xf32>
      %123 = vector.extract_strided_slice %12 {offsets = [0, 18], sizes = [32, 1], strides = [1, 1]} : vector<32x32xf32> to vector<32x1xf32>
      %124 = vector.extract_strided_slice %11 {offsets = [18, 0], sizes = [1, 256], strides = [1, 1]} : vector<32x256xf32> to vector<1x256xf32>
      %125 = vector.broadcast %123 : vector<32x1xf32> to vector<32x256xf32>
      %126 = vector.broadcast %124 : vector<1x256xf32> to vector<32x256xf32>
      %127 = arith.mulf %125, %126 : vector<32x256xf32>
      %128 = arith.addf %122, %127 : vector<32x256xf32>
      %129 = vector.extract_strided_slice %12 {offsets = [0, 19], sizes = [32, 1], strides = [1, 1]} : vector<32x32xf32> to vector<32x1xf32>
      %130 = vector.extract_strided_slice %11 {offsets = [19, 0], sizes = [1, 256], strides = [1, 1]} : vector<32x256xf32> to vector<1x256xf32>
      %131 = vector.broadcast %129 : vector<32x1xf32> to vector<32x256xf32>
      %132 = vector.broadcast %130 : vector<1x256xf32> to vector<32x256xf32>
      %133 = arith.mulf %131, %132 : vector<32x256xf32>
      %134 = arith.addf %128, %133 : vector<32x256xf32>
      %135 = vector.extract_strided_slice %12 {offsets = [0, 20], sizes = [32, 1], strides = [1, 1]} : vector<32x32xf32> to vector<32x1xf32>
      %136 = vector.extract_strided_slice %11 {offsets = [20, 0], sizes = [1, 256], strides = [1, 1]} : vector<32x256xf32> to vector<1x256xf32>
      %137 = vector.broadcast %135 : vector<32x1xf32> to vector<32x256xf32>
      %138 = vector.broadcast %136 : vector<1x256xf32> to vector<32x256xf32>
      %139 = arith.mulf %137, %138 : vector<32x256xf32>
      %140 = arith.addf %134, %139 : vector<32x256xf32>
      %141 = vector.extract_strided_slice %12 {offsets = [0, 21], sizes = [32, 1], strides = [1, 1]} : vector<32x32xf32> to vector<32x1xf32>
      %142 = vector.extract_strided_slice %11 {offsets = [21, 0], sizes = [1, 256], strides = [1, 1]} : vector<32x256xf32> to vector<1x256xf32>
      %143 = vector.broadcast %141 : vector<32x1xf32> to vector<32x256xf32>
      %144 = vector.broadcast %142 : vector<1x256xf32> to vector<32x256xf32>
      %145 = arith.mulf %143, %144 : vector<32x256xf32>
      %146 = arith.addf %140, %145 : vector<32x256xf32>
      %147 = vector.extract_strided_slice %12 {offsets = [0, 22], sizes = [32, 1], strides = [1, 1]} : vector<32x32xf32> to vector<32x1xf32>
      %148 = vector.extract_strided_slice %11 {offsets = [22, 0], sizes = [1, 256], strides = [1, 1]} : vector<32x256xf32> to vector<1x256xf32>
      %149 = vector.broadcast %147 : vector<32x1xf32> to vector<32x256xf32>
      %150 = vector.broadcast %148 : vector<1x256xf32> to vector<32x256xf32>
      %151 = arith.mulf %149, %150 : vector<32x256xf32>
      %152 = arith.addf %146, %151 : vector<32x256xf32>
      %153 = vector.extract_strided_slice %12 {offsets = [0, 23], sizes = [32, 1], strides = [1, 1]} : vector<32x32xf32> to vector<32x1xf32>
      %154 = vector.extract_strided_slice %11 {offsets = [23, 0], sizes = [1, 256], strides = [1, 1]} : vector<32x256xf32> to vector<1x256xf32>
      %155 = vector.broadcast %153 : vector<32x1xf32> to vector<32x256xf32>
      %156 = vector.broadcast %154 : vector<1x256xf32> to vector<32x256xf32>
      %157 = arith.mulf %155, %156 : vector<32x256xf32>
      %158 = arith.addf %152, %157 : vector<32x256xf32>
      %159 = vector.extract_strided_slice %12 {offsets = [0, 24], sizes = [32, 1], strides = [1, 1]} : vector<32x32xf32> to vector<32x1xf32>
      %160 = vector.extract_strided_slice %11 {offsets = [24, 0], sizes = [1, 256], strides = [1, 1]} : vector<32x256xf32> to vector<1x256xf32>
      %161 = vector.broadcast %159 : vector<32x1xf32> to vector<32x256xf32>
      %162 = vector.broadcast %160 : vector<1x256xf32> to vector<32x256xf32>
      %163 = arith.mulf %161, %162 : vector<32x256xf32>
      %164 = arith.addf %158, %163 : vector<32x256xf32>
      %165 = vector.extract_strided_slice %12 {offsets = [0, 25], sizes = [32, 1], strides = [1, 1]} : vector<32x32xf32> to vector<32x1xf32>
      %166 = vector.extract_strided_slice %11 {offsets = [25, 0], sizes = [1, 256], strides = [1, 1]} : vector<32x256xf32> to vector<1x256xf32>
      %167 = vector.broadcast %165 : vector<32x1xf32> to vector<32x256xf32>
      %168 = vector.broadcast %166 : vector<1x256xf32> to vector<32x256xf32>
      %169 = arith.mulf %167, %168 : vector<32x256xf32>
      %170 = arith.addf %164, %169 : vector<32x256xf32>
      %171 = vector.extract_strided_slice %12 {offsets = [0, 26], sizes = [32, 1], strides = [1, 1]} : vector<32x32xf32> to vector<32x1xf32>
      %172 = vector.extract_strided_slice %11 {offsets = [26, 0], sizes = [1, 256], strides = [1, 1]} : vector<32x256xf32> to vector<1x256xf32>
      %173 = vector.broadcast %171 : vector<32x1xf32> to vector<32x256xf32>
      %174 = vector.broadcast %172 : vector<1x256xf32> to vector<32x256xf32>
      %175 = arith.mulf %173, %174 : vector<32x256xf32>
      %176 = arith.addf %170, %175 : vector<32x256xf32>
      %177 = vector.extract_strided_slice %12 {offsets = [0, 27], sizes = [32, 1], strides = [1, 1]} : vector<32x32xf32> to vector<32x1xf32>
      %178 = vector.extract_strided_slice %11 {offsets = [27, 0], sizes = [1, 256], strides = [1, 1]} : vector<32x256xf32> to vector<1x256xf32>
      %179 = vector.broadcast %177 : vector<32x1xf32> to vector<32x256xf32>
      %180 = vector.broadcast %178 : vector<1x256xf32> to vector<32x256xf32>
      %181 = arith.mulf %179, %180 : vector<32x256xf32>
      %182 = arith.addf %176, %181 : vector<32x256xf32>
      %183 = vector.extract_strided_slice %12 {offsets = [0, 28], sizes = [32, 1], strides = [1, 1]} : vector<32x32xf32> to vector<32x1xf32>
      %184 = vector.extract_strided_slice %11 {offsets = [28, 0], sizes = [1, 256], strides = [1, 1]} : vector<32x256xf32> to vector<1x256xf32>
      %185 = vector.broadcast %183 : vector<32x1xf32> to vector<32x256xf32>
      %186 = vector.broadcast %184 : vector<1x256xf32> to vector<32x256xf32>
      %187 = arith.mulf %185, %186 : vector<32x256xf32>
      %188 = arith.addf %182, %187 : vector<32x256xf32>
      %189 = vector.extract_strided_slice %12 {offsets = [0, 29], sizes = [32, 1], strides = [1, 1]} : vector<32x32xf32> to vector<32x1xf32>
      %190 = vector.extract_strided_slice %11 {offsets = [29, 0], sizes = [1, 256], strides = [1, 1]} : vector<32x256xf32> to vector<1x256xf32>
      %191 = vector.broadcast %189 : vector<32x1xf32> to vector<32x256xf32>
      %192 = vector.broadcast %190 : vector<1x256xf32> to vector<32x256xf32>
      %193 = arith.mulf %191, %192 : vector<32x256xf32>
      %194 = arith.addf %188, %193 : vector<32x256xf32>
      %195 = vector.extract_strided_slice %12 {offsets = [0, 30], sizes = [32, 1], strides = [1, 1]} : vector<32x32xf32> to vector<32x1xf32>
      %196 = vector.extract_strided_slice %11 {offsets = [30, 0], sizes = [1, 256], strides = [1, 1]} : vector<32x256xf32> to vector<1x256xf32>
      %197 = vector.broadcast %195 : vector<32x1xf32> to vector<32x256xf32>
      %198 = vector.broadcast %196 : vector<1x256xf32> to vector<32x256xf32>
      %199 = arith.mulf %197, %198 : vector<32x256xf32>
      %200 = arith.addf %194, %199 : vector<32x256xf32>
      %201 = vector.extract_strided_slice %12 {offsets = [0, 31], sizes = [32, 1], strides = [1, 1]} : vector<32x32xf32> to vector<32x1xf32>
      %202 = vector.extract_strided_slice %11 {offsets = [31, 0], sizes = [1, 256], strides = [1, 1]} : vector<32x256xf32> to vector<1x256xf32>
      %203 = vector.broadcast %201 : vector<32x1xf32> to vector<32x256xf32>
      %204 = vector.broadcast %202 : vector<1x256xf32> to vector<32x256xf32>
      %205 = arith.mulf %203, %204 : vector<32x256xf32>
      %206 = arith.addf %200, %205 : vector<32x256xf32>
      %207 = math.tanh %206 : vector<32x256xf32>
      %c0_10 = arith.constant 0 : index
      %c0_11 = arith.constant 0 : index
      %208 = vector.load %arg6[%c0_10, %c0_11] : memref<32x1xf32, #tpu.memory_space<vmem>>, vector<32x1xf32>
      %c0_12 = arith.constant 0 : index
      %c0_13 = arith.constant 0 : index
      %209 = vector.load %arg7[%c0_12, %c0_13] : memref<1x1xf32, #tpu.memory_space<vmem>>, vector<1x1xf32>
      %210 = vector.broadcast %208 : vector<32x1xf32> to vector<32x256xf32>
      %211 = arith.mulf %210, %207 : vector<32x256xf32>
      %cst = arith.constant dense<0.000000e+00> : vector<256xf32>
      %212 = vector.multi_reduction <add>, %211, %cst [0] : vector<32x256xf32> to vector<256xf32>
      %213 = vector.shape_cast %212 : vector<256xf32> to vector<1x256xf32>
      %214 = vector.broadcast %209 : vector<1x1xf32> to vector<1x256xf32>
      %215 = arith.addf %213, %214 : vector<1x256xf32>
      %216 = arith.index_cast %arg9 : i32 to index
      %c0_14 = arith.constant 0 : index
      %c0_15 = arith.constant 0 : index
      %217 = vector.load %arg8[%216, %c0_14, %c0_15] : memref<4x1x256xf32, #tpu.memory_space<vmem>>, vector<1x1x256xf32>
      %218 = vector.shape_cast %217 : vector<1x1x256xf32> to vector<1x256xf32>
      %219 = vector.shape_cast %215 : vector<1x256xf32> to vector<1x1x256xf32>
      tpu.vector_store %arg8[%216, %c0_14, %c0_15], %219 {strides = array<i32>} : memref<4x1x256xf32, #tpu.memory_space<vmem>>, vector<1x1x256xf32>,
    }
    %c4_i32_0 = arith.constant 4 : i32
    return
  }
  func.func @transform_0(%arg0: i32) -> (i32, i32, i32) {
    %c0_i32 = arith.constant 0 : i32
    %c0_i32_0 = arith.constant 0 : i32
    %c0_i32_1 = arith.constant 0 : i32
    return %arg0, %c0_i32, %c0_i32_0 : i32, i32, i32
  }
  func.func @transform_1(%arg0: i32) -> (i32, i32) {
    %c0_i32 = arith.constant 0 : i32
    %c0_i32_0 = arith.constant 0 : i32
    %c0_i32_1 = arith.constant 0 : i32
    return %c0_i32, %c0_i32_0 : i32, i32
  }
  func.func @transform_2(%arg0: i32) -> (i32, i32) {
    %c0_i32 = arith.constant 0 : i32
    %c0_i32_0 = arith.constant 0 : i32
    %c0_i32_1 = arith.constant 0 : i32
    return %c0_i32, %c0_i32_0 : i32, i32
  }
  func.func @transform_3(%arg0: i32) -> (i32, i32) {
    %c0_i32 = arith.constant 0 : i32
    %c0_i32_0 = arith.constant 0 : i32
    %c0_i32_1 = arith.constant 0 : i32
    return %c0_i32, %c0_i32_0 : i32, i32
  }
  func.func @transform_4(%arg0: i32) -> (i32, i32) {
    %c0_i32 = arith.constant 0 : i32
    %c0_i32_0 = arith.constant 0 : i32
    %c0_i32_1 = arith.constant 0 : i32
    return %c0_i32, %c0_i32_0 : i32, i32
  }
  func.func @transform_5(%arg0: i32) -> (i32, i32) {
    %c0_i32 = arith.constant 0 : i32
    %c0_i32_0 = arith.constant 0 : i32
    %c0_i32_1 = arith.constant 0 : i32
    return %c0_i32, %c0_i32_0 : i32, i32
  }
  func.func @transform_6(%arg0: i32) -> (i32, i32) {
    %c0_i32 = arith.constant 0 : i32
    %c0_i32_0 = arith.constant 0 : i32
    %c0_i32_1 = arith.constant 0 : i32
    return %c0_i32, %c0_i32_0 : i32, i32
  }
  func.func @transform_7(%arg0: i32) -> (i32, i32, i32) {
    %c0_i32 = arith.constant 0 : i32
    %c0_i32_0 = arith.constant 0 : i32
    %c0_i32_1 = arith.constant 0 : i32
    return %arg0, %c0_i32, %c0_i32_0 : i32, i32, i32
  }
}

</mosaic_0001>

<bundles_post_ra>
// kernel: tpu_custom_call.1
= control target key start
LH: loop header
LB: loop body
LE: loop exit
PB: predicated region body
PF: predicated region fallthrough
CT: control target
= control target key end

     0   :  { %s3286_s0 = inlined_call_operand.vmem [shape: f32[8,1,256], index: 0, kind: input, shape index: {}]   ;;  %s3287_s1 = inlined_call_operand.vmem [shape: f32[32,1], index: 1, kind: input, shape index: {}]   ;;  %s3288_s2 = inlined_call_operand.vmem [shape: f32[32,1], index: 2, kind: input, shape index: {}]   ;;  %s3289_s3 = inlined_call_operand.vmem [shape: f32[32,32], index: 3, kind: input, shape index: {}]   ;;  %s3290_s4 = inlined_call_operand.vmem [shape: f32[32,1], index: 4, kind: input, shape index: {}]   ;;  %s3291_s5 = inlined_call_operand.vmem [shape: f32[32,1], index: 5, kind: input, shape index: {}]   ;;  %s3292_s6 = inlined_call_operand.<no memory space> [shape: f32[1,1], index: 6, kind: input, shape index: {}]   ;;  %s3293_s7 = inlined_call_operand.hbm [shape: f32[8,1,256], index: 7, kind: output, shape index: {}]  }
   0x1   :  { %v12_v0 = vstv %s3292_s6 }
   0x2   :  { %13 = vst [vmem:[#allocation2] sm:$0x1] %v12_v0 }
   0x3   :  { %14 = vsyncpa [#allocation4], 0 }
   0x4   :  { %16 = vsyncpa [#allocation4 + $0x1], 0  ;;  %s2225_s26 = smov 0   ;;  %s2227_s27 = smov 0  }
   0x5   :  { %s2229_s28 = smov 0   ;;  %s2231_s29 = smov 0  }
   0x6 LB: > { %s2246_s6 = sadd.s32 4294967295, %s2140_s29   ;;  %s1866_s30 = sadd.s32 4294967294, %s2140_s29   ;;  %s2140_s29 = sphi %s2231_s29, %s3405_s29   ;;  %s2136_s28 = sphi %s2229_s28, %s3404_s28   ;;  %s2132_s27 = sphi %s2227_s27, %s3403_s27   ;;  %s2128_s26 = sphi %s2225_s26, %s3402_s26  }
   0x7   : > { %s2250_s8 = sadd.s32 1, %s2140_s29   ;;  %s181_s9 = sadd.s32 1, %s2136_s28 }
   0x8   : > { %s178_s10 = ssub.s32 %s2140_s29, %s2250_s8  ;;  %p191_p0 = scmp.ne.s32.totalorder %s2136_s28, %s2132_s27 }
   0x9   : > { %p179_p1 = scmp.eq.s32.totalorder %s178_s10, 0  ;;  %p192_p2 = scmp.eq.s32.totalorder %s2246_s6, 1 }
   0xa   : > { %p197_p3 = scmp.ne.s32.totalorder %s2132_s27, %s2128_s26  ;;  %p198_p4 = scmp.eq.s32.totalorder %s1866_s30, 1 }
   0xb   : > { %s2261_s11 = scalar_select %p179_p1, %s2136_s28, %s181_s9  }
   0xc   : > { %p2263_p5 = por %p192_p2, %p191_p0  ;;  %p2267_p6 = por %p198_p4, %p197_p3 }
   0xd   : > { %p1869_p7 = scmp.ge.s32.totalorder %s2140_s29, 1  ;;  %p243_p8 = scmp.lt.s32.totalorder %s2140_s29, 3 }
   0xf   : > { %p244_p9 = pnand %p1869_p7, %p243_p8 }
  0x10   : > { %s272_s14 = sand.u32 (!%p244_p9), 1, %s2132_s27   ;;  %s1871_s15 = sshll.u32 (!%p244_p9), %s2246_s6, 2 }
  0x11   : > { %247 = sbr.rel (%p244_p9) target bundleno = 589 (0x24d), region = 48  ;;  %s2277_s16 = sshll.u32 (!%p244_p9), %s272_s14, 3 }
  0x12   : > { %p276_p10 = scmp.lt.s32.totalorder (!%p244_p9), %s1871_s15, 7  ;;  %s274_s21 = scalar_lea.vmem (!%p244_p9), [#allocation3], %s2277_s16 }
  0x13   : > { %s2285_s22 = smov (!%p244_p9), 0  }
  0x18   : > { %s3407_s15 = smov (!%p276_p10, %s1871_s15), 7 }
  0x19   : > { %s1872_s17 = sshll.u32 %s3407_s15, 1 }
  0x1a   : > { %s2282_s20 = scalar_lea.vmem %s3286_s0, %s1872_s17 }
  0x1b LB: >> { %v293_v1 = vld [vmem:[%s3287_s1 + $0x10] sm:$0xff]  ;;  %v291_v2 = vld [vmem:[%s3287_s1] sm:$0xff]  ;;  %v3296_v3 = vmov 0   ;;  %v294_v4 = vld [vmem:[%s3287_s1 + $0x18] sm:$0xff]  ;;  %v2147_v18 = vmov 1   ;;  %v2148_v19 = vmov 2   ;;  %v3294_v32 = vlaneseq  ;;  %s2144_s22 = sphi %s2285_s22, %s287_s22  }
  0x1c   : >> { %1965 = vset.pattern.permute.xlu1 %v3296_v3  ;;  %1964 = vset.pattern.permute.xlu0 %v3296_v3  ;;  %v292_v5 = vld [vmem:[%s3287_s1 + $0x8] sm:$0xff]  ;;  %v295_v7 = vld [vmem:[%s3288_s2] sm:$0xff]  ;;  %v298_v8 = vld [vmem:[%s3288_s2 + $0x18] sm:$0xff]  ;;  %v2149_v20 = vmov 3   ;;  %v2150_v21 = vmov 4   ;;  %v2151_v22 = vmov 5  }
  0x1d   : >> { %311 = vperm.xlu1 %1965, %v293_v1   ;;  %301 = vperm.xlu0 %1964, %v291_v2   ;;  %v296_v6 = vld [vmem:[%s3288_s2 + $0x8] sm:$0xff]  ;;  %v297_v9 = vld [vmem:[%s3288_s2 + $0x10] sm:$0xff]  ;;  %v2324_v11 = vld [vmem:[%s3289_s3] sm:$0xff]  ;;  %v2152_v23 = vmov 6   ;;  %v2153_v24 = vmov 7   ;;  %v2154_v25 = vmov 8  }
  0x1e   : >> { %v2319_v10 = vld [vmem:[%s3289_s3 + $0x8] sm:$0xff]  ;;  %v2331_v12 = vld [vmem:[%s3289_s3 + $0x18] sm:$0xff]  ;;  %v2336_v13 = vld [vmem:[%s3289_s3 + $0x10] sm:$0xff]  ;;  %v2155_v26 = vmov 9   ;;  %v2156_v27 = vmov 10   ;;  %v2157_v28 = vmov 11  }
  0x1f   : >> { %v379_v14 = vld [vmem:[%s3290_s4 + $0x8] sm:$0xff]  ;;  %v378_v15 = vld [vmem:[%s3290_s4] sm:$0xff]  ;;  %v381_v16 = vld [vmem:[%s3290_s4 + $0x18] sm:$0xff]  ;;  %v2158_v29 = vmov 12   ;;  %v2159_v30 = vmov 13   ;;  %v2160_v31 = vmov 14  }
  0x20   : >> { %v380_v17 = vld [vmem:[%s3290_s4 + $0x10] sm:$0xff]  ;;  %s1873_s25 = sshll.u32 %s2144_s22, 1  ;;  %v2401_v35 = vshrl.u32 %v3294_v32, 7  ;;  %v2161_v36 = vmov 15   ;;  %v2162_v48 = vmov 16   ;;  %v2163_v55 = vmov 17  }
  0x21   : >> { %316 = vperm.xlu1 %1965, %v294_v4   ;;  %306 = vperm.xlu0 %1964, %v292_v5   ;;  %s289_s30 = scalar_lea.vmem %s2282_s20, %s1873_s25  ;;  %v3303_v60 = vmov 18   ;;  %v3302_v1 = vmov 19   ;;  %s1774_s24 = scalar_lea.vmem %s274_s21, %s1873_s25 [#allocation3] }
  0x22   : >> { %3345 = vst [vmem:[#allocation7_spill] sm:$0xff] %v2401_v35  ;;  %v2414_v39 = vsub.s32 0, %v2401_v35  ;;  %v2417_v40 = vsub.s32 1, %v2401_v35  ;;  %v290_v41 = vld [vmem:[%s289_s30] sm:$0x3]  ;;  %s287_s22 = sadd.s32 1, %s2144_s22  }
  0x23   : >> { %p284_p11 = scmp.ge.s32.totalorder %s287_s22, 4  }
  0x24   : >> { %3347 = vst [vmem:[#allocation9_spill] sm:$0xff] %v2414_v39  ;;  %3348 = vst [vmem:[#allocation10_spill] sm:$0xff] %v2417_v40  ;;  %v2424_v44 = vrot.slane %v290_v41, %v2414_v39  ;;  %v2427_v45 = vrot.slane %v290_v41, %v2417_v40  ;;  %s1881_s30 = sshll.u32 (%p284_p11), %s2246_s6, 7  ;;  %s1795_s25 = sshll.u32 (%p284_p11), %s274_s21, 4  ;;  %s3241_s25 = int_to_ptr.vmem [resolvable:$true] %s1795_s25 }
  0x25   : >> { %345 = vperm.xlu1 %1965, %v296_v6   ;;  %340 = vperm.xlu0 %1964, %v295_v7   ;;  %s3237_s15 = scalar_lea.hbm (%p284_p11), %s3293_s7, %s1881_s30  ;;  %s3245_s22 = scalar_lea.sflag (%p284_p11), [#allocation4], %s272_s14 }
  0x26   : >> { %3349 = vst [vmem:[#allocation11_spill] sm:$0xff] %v2424_v44  ;;  %3350 = vst [vmem:[#allocation12_spill] sm:$0xff] %v2427_v45  ;;  %s2074_s20 = scalar_lea.vmem (%p284_p11), %s3241_s25, 128  ;;  %s2179_s6 = smov (%p284_p11), [#allocation3]  }
  0x27   : > { %p2075_p12 = scmp.ne.s32.totalorder (%p284_p11), %s3241_s25, %s2074_s20  ;;  %s2078_s17 = sshll.u32 (%p284_p11), %s2179_s6, 4  ;;  %s2079_s17 = int_to_ptr.vmem [resolvable:$false] %s2078_s17 }
  0x28   : > { %s2080_s18 = scalar_lea.vmem (%p284_p11), %s2079_s17, 256  ;;  %p2081_p1 = scmp.lt.s32.totalorder (%p284_p11), %s3241_s25, %s2079_s17 }
  0x29   : >> { %355 = vperm.xlu1 %1965, %v298_v8   ;;  %350 = vperm.xlu0 %1964, %v297_v9   ;;  %p2076_p13 = pnand (%p284_p11), %p2075_p12, %p2263_p5  ;;  %p2082_p2 = scmp.lt.s32.totalorder (%p284_p11), %s2080_s18, %s2074_s20 }
  0x2b   : > { %p2077_p0 = pneg (%p284_p11), %p2076_p13  ;;  %p2083_p3 = por (%p284_p11), %p2082_p2, %p2081_p1 }
  0x2d   : >> { %389 = vperm.xlu1 %1965, %v2319_v10   ;;  %384 = vperm.xlu0 %1964, %v2324_v11   ;;  %p2084_p4 = pnand (%p284_p11), %p2083_p3, %p2077_p0 }
  0x31   : >> { %399 = vperm.xlu1 %1965, %v2331_v12   ;;  %394 = vperm.xlu0 %1964, %v2336_v13  }
  0x35   : >> { %425 = vperm.xlu1 %1965, %v379_v14   ;;  %420 = vperm.xlu0 %1964, %v378_v15   ;;  %v2477_v15 = vsub.s32 2, %v2401_v35 }
  0x37   : >> { %3353 = vst [vmem:[#allocation15_spill] sm:$0xff] %v2477_v15 }
  0x39   : >> { %435 = vperm.xlu1 %1965, %v381_v16   ;;  %430 = vperm.xlu0 %1964, %v380_v17  }
  0x3d   : >> { %1967 = vset.pattern.permute.xlu1 %v2147_v18  ;;  %1966 = vset.pattern.permute.xlu0 %v2147_v18 }
  0x3e   : >> { %451 = vperm.xlu1 %1967, %v2319_v10   ;;  %447 = vperm.xlu0 %1966, %v2324_v11  }
  0x42   : >> { %455 = vperm.xlu1 %1967, %v2336_v13   ;;  %459 = vperm.xlu0 %1966, %v2331_v12  }
  0x46   : >> { %1968 = vset.pattern.permute.xlu1 %v2148_v19  ;;  %1969 = vset.pattern.permute.xlu0 %v2148_v19 }
  0x47   : >> { %487 = vperm.xlu1 %1968, %v2324_v11   ;;  %491 = vperm.xlu0 %1969, %v2319_v10  }
  0x4b   : >> { %495 = vperm.xlu1 %1968, %v2336_v13   ;;  %1970 = vset.pattern.permute.xlu0 %v2149_v20 }
  0x4c   : >> { %527 = vperm.xlu0 %1970, %v2324_v11  }
  0x4f   : >> { %499 = vperm.xlu1 %1968, %v2331_v12  }
  0x50   : >> { %539 = vperm.xlu0 %1970, %v2331_v12  }
  0x53   : >> { %1971 = vset.pattern.permute.xlu1 %v2149_v20 }
  0x54   : >> { %531 = vperm.xlu1 %1971, %v2319_v10   ;;  %1973 = vset.pattern.permute.xlu0 %v2150_v21 }
  0x55   : >> { %571 = vperm.xlu0 %1973, %v2319_v10  }
  0x58   : >> { %535 = vperm.xlu1 %1971, %v2336_v13  }
  0x59   : >> { %1974 = vset.pattern.permute.xlu0 %v2151_v22 }
  0x5a   : >> { %607 = vperm.xlu0 %1974, %v2324_v11  }
  0x5c   : >> { %1972 = vset.pattern.permute.xlu1 %v2150_v21 }
  0x5d   : >> { %567 = vperm.xlu1 %1972, %v2324_v11  }
  0x5e   : >> { %619 = vperm.xlu0 %1974, %v2331_v12  }
  0x61   : >> { %575 = vperm.xlu1 %1972, %v2336_v13  }
  0x62   : >> { %1977 = vset.pattern.permute.xlu0 %v2152_v23 }
  0x63   : >> { %651 = vperm.xlu0 %1977, %v2319_v10  }
  0x65   : >> { %579 = vperm.xlu1 %1972, %v2331_v12  }
  0x67   : >> { %1978 = vset.pattern.permute.xlu0 %v2153_v24 }
  0x68   : >> { %687 = vperm.xlu0 %1978, %v2324_v11  }
  0x69   : >> { %1975 = vset.pattern.permute.xlu1 %v2151_v22 }
  0x6a   : >> { %611 = vperm.xlu1 %1975, %v2319_v10  }
  0x6c   : >> { %699 = vperm.xlu0 %1978, %v2331_v12  }
  0x6e   : >> { %615 = vperm.xlu1 %1975, %v2336_v13  }
  0x70   : >> { %1981 = vset.pattern.permute.xlu0 %v2154_v25 }
  0x71   : >> { %731 = vperm.xlu0 %1981, %v2319_v10  }
  0x72   : >> { %1976 = vset.pattern.permute.xlu1 %v2152_v23 }
  0x73   : >> { %647 = vperm.xlu1 %1976, %v2324_v11  }
  0x75   : >> { %1982 = vset.pattern.permute.xlu0 %v2155_v26 }
  0x76   : >> { %767 = vperm.xlu0 %1982, %v2324_v11  }
  0x77   : >> { %655 = vperm.xlu1 %1976, %v2336_v13  }
  0x7a   : >> { %779 = vperm.xlu0 %1982, %v2331_v12  }
  0x7b   : >> { %659 = vperm.xlu1 %1976, %v2331_v12  }
  0x7e   : >> { %1985 = vset.pattern.permute.xlu0 %v2156_v27 }
  0x7f   : >> { %1979 = vset.pattern.permute.xlu1 %v2153_v24  ;;  %811 = vperm.xlu0 %1985, %v2319_v10   ;;  %v3298_v24 = vmov 20  }
  0x80   : >> { %691 = vperm.xlu1 %1979, %v2319_v10  }
  0x83   : >> { %1986 = vset.pattern.permute.xlu0 %v2157_v28 }
  0x84   : >> { %695 = vperm.xlu1 %1979, %v2336_v13   ;;  %847 = vperm.xlu0 %1986, %v2324_v11  }
  0x88   : >> { %1980 = vset.pattern.permute.xlu1 %v2154_v25  ;;  %859 = vperm.xlu0 %1986, %v2331_v12   ;;  %v2501_v25 = vsub.s32 3, %v2401_v35 }
  0x89   : >> { %727 = vperm.xlu1 %1980, %v2324_v11  }
  0x8a   : >> { %3354 = vst [vmem:[#allocation16_spill] sm:$0xff] %v2501_v25 }
  0x8c   : >> { %1989 = vset.pattern.permute.xlu0 %v2158_v29 }
  0x8d   : >> { %735 = vperm.xlu1 %1980, %v2336_v13   ;;  %891 = vperm.xlu0 %1989, %v2319_v10  }
  0x91   : >> { %739 = vperm.xlu1 %1980, %v2331_v12   ;;  %1990 = vset.pattern.permute.xlu0 %v2159_v30 }
  0x92   : >> { %927 = vperm.xlu0 %1990, %v2324_v11  }
  0x95   : >> { %1983 = vset.pattern.permute.xlu1 %v2155_v26 }
  0x96   : >> { %771 = vperm.xlu1 %1983, %v2319_v10   ;;  %939 = vperm.xlu0 %1990, %v2331_v12  }
  0x9a   : >> { %775 = vperm.xlu1 %1983, %v2336_v13   ;;  %1993 = vset.pattern.permute.xlu0 %v2160_v31 }
  0x9b   : >> { %971 = vperm.xlu0 %1993, %v2319_v10  }
  0x9c   : >> { %v2397_v33 = vpop.permute.xlu1 %311  ;;  %v302_v34 = vpop.permute.xlu0 %301 }
  0x9d   : >> { %3344 = vst [vmem:[#allocation6_spill] sm:$0xff] %v2397_v33  ;;  %v330_v46 = vmul.f32 %v2424_v44, %v302_v34  ;;  %v331_v50 = vmul.f32 %v2427_v45, %v302_v34 }
  0x9e   : >> { %1984 = vset.pattern.permute.xlu1 %v2156_v27 }
  0x9f   : >> { %807 = vperm.xlu1 %1984, %v2324_v11   ;;  %1994 = vset.pattern.permute.xlu0 %v2161_v36 }
  0xa0   : >> { %v2408_v37 = vpop.permute.xlu1 %316  ;;  %1007 = vperm.xlu0 %1994, %v2324_v11   ;;  %v2411_v38 = vpop.permute.xlu0 %306 }
  0xa1   : >> { %3346 = vst [vmem:[#allocation8_spill] sm:$0xff] %v2408_v37 }
  0xa3   : >> { %815 = vperm.xlu1 %1984, %v2336_v13  }
  0xa4   : >> { %v2420_v42 = vpop.permute.xlu1 %345  ;;  %1019 = vperm.xlu0 %1994, %v2331_v12   ;;  %v341_v43 = vpop.permute.xlu0 %340 }
  0xa5   : >> { %v358_v51 = vadd.f32 %v341_v43, %v330_v46  ;;  %v359_v54 = vadd.f32 %v341_v43, %v331_v50 }
  0xa7   : >> { %819 = vperm.xlu1 %1984, %v2331_v12   ;;  %2038 = vtanh.f32 %v358_v51  ;;  %v3295_v51 = vmov 21  }
  0xa8   : >> { %v2431_v47 = vpop.permute.xlu1 %355  ;;  %1997 = vset.pattern.permute.xlu0 %v2162_v48  ;;  %v2434_v49 = vpop.permute.xlu0 %350  ;;  %2040 = vtanh.f32 %v359_v54  ;;  %v2522_v54 = vsub.s32 4, %v2401_v35 }
  0xa9   : >> { %3351 = vst [vmem:[#allocation13_spill] sm:$0xff] %v2431_v47  ;;  %3352 = vst [vmem:[#allocation14_spill] sm:$0xff] %v2434_v49  ;;  %1051 = vperm.xlu0 %1997, %v2319_v10   ;;  %v3313_v47 = vmov 30   ;;  %v3321_v49 = vmov 31  }
  0xab   : >> { %1987 = vset.pattern.permute.xlu1 %v2157_v28 }
  0xac   : >> { %851 = vperm.xlu1 %1987, %v2319_v10   ;;  %v390_v52 = vpop.permute.xlu1 %389  ;;  %v385_v53 = vpop.permute.xlu0 %384 }
  0xad   : >> { %1998 = vset.pattern.permute.xlu0 %v2163_v55 }
  0xae   : >> { %1087 = vperm.xlu0 %1998, %v2324_v11  }
  0xb0   : >> { %855 = vperm.xlu1 %1987, %v2336_v13   ;;  %v400_v56 = vpop.permute.xlu1 %399  ;;  %v2442_v57 = vpop.permute.xlu0 %394 }
  0xb1   : >> { %v2455_v63 = vpop.eup %2038 }
  0xb2   : >> { %1099 = vperm.xlu0 %1998, %v2331_v12   ;;  %v2457_v0 = vpop.eup %2040  ;;  %v2464_v5 = vrot.slane %v2455_v63, %v2414_v39  ;;  %v2481_v16 = vrot.slane %v2455_v63, %v2417_v40  ;;  %v2490_v18 = vrot.slane %v2455_v63, %v2477_v15  ;;  %v2506_v28 = vrot.slane %v2455_v63, %v2501_v25 }
  0xb3   : >> { %v2468_v6 = vrot.slane %v2457_v0, %v2414_v39  ;;  %v2485_v17 = vrot.slane %v2457_v0, %v2417_v40  ;;  %v2494_v19 = vrot.slane %v2457_v0, %v2477_v15 }
  0xb4   : >> { %1988 = vset.pattern.permute.xlu1 %v2158_v29  ;;  %v2445_v58 = vpop.permute.xlu1 %425  ;;  %v421_v59 = vpop.permute.xlu0 %420  ;;  %v410_v7 = vmul.f32 %v2464_v5, %v385_v53  ;;  %v2510_v29 = vrot.slane %v2457_v0, %v2501_v25  ;;  %v412_v46 = vmul.f32 %v2464_v5, %v390_v52 }
  0xb5   : >> { %887 = vperm.xlu1 %1988, %v2324_v11   ;;  %v411_v8 = vmul.f32 %v2468_v6, %v385_v53  ;;  %v413_v50 = vmul.f32 %v2468_v6, %v390_v52 }
  0xb6   : >> { %2001 = vset.pattern.permute.xlu0 %v3303_v60  ;;  %v438_v20 = vadd.f32 %v421_v59, %v410_v7 }
  0xb7   : >> { %1131 = vperm.xlu0 %2001, %v2319_v10   ;;  %v439_v21 = vadd.f32 %v421_v59, %v411_v8  ;;  %v416_v59 = vmul.f32 %v2464_v5, %v400_v56 }
  0xb8   : >> { %v2450_v61 = vpop.permute.xlu1 %435  ;;  %v2452_v62 = vpop.permute.xlu0 %430 }
  0xb9   : >> { %895 = vperm.xlu1 %1988, %v2336_v13   ;;  %v444_v32 = vadd.f32 %v2450_v61, %v416_v59 }
  0xbb   : >> { %2002 = vset.pattern.permute.xlu0 %v3302_v1 }
  0xbc   : >> { %1167 = vperm.xlu0 %2002, %v2324_v11  }
  0xbd   : >> { %899 = vperm.xlu1 %1988, %v2331_v12   ;;  %v452_v2 = vpop.permute.xlu1 %451  ;;  %v448_v4 = vpop.permute.xlu0 %447 }
  0xbe   : >> { %v470_v22 = vmul.f32 %v2481_v16, %v448_v4  ;;  %v471_v23 = vmul.f32 %v2485_v17, %v448_v4  ;;  %v417_v4 = vmul.f32 %v2468_v6, %v400_v56 }
  0xc0   : >> { %1179 = vperm.xlu0 %2002, %v2331_v12   ;;  %v479_v34 = vadd.f32 %v471_v23, %v439_v21  ;;  %v440_v23 = vadd.f32 %v2445_v58, %v412_v46  ;;  %v445_v56 = vadd.f32 %v2450_v61, %v417_v4 }
  0xc1   : >> { %1991 = vset.pattern.permute.xlu1 %v2159_v30  ;;  %v2474_v9 = vpop.permute.xlu1 %455  ;;  %v460_v14 = vpop.permute.xlu0 %459  ;;  %v478_v30 = vadd.f32 %v470_v22, %v438_v20 }
  0xc2   : >> { %931 = vperm.xlu1 %1991, %v2319_v10   ;;  %v476_v7 = vmul.f32 %v2481_v16, %v460_v14  ;;  %v477_v52 = vmul.f32 %v2485_v17, %v460_v14  ;;  %v473_v14 = vmul.f32 %v2485_v17, %v452_v2 }
  0xc4   : >> { %2005 = vset.pattern.permute.xlu0 %v3298_v24 }
  0xc5   : >> { %1211 = vperm.xlu0 %2005, %v2319_v10  }
  0xc6   : >> { %935 = vperm.xlu1 %1991, %v2336_v13   ;;  %v488_v26 = vpop.permute.xlu1 %487  ;;  %v492_v27 = vpop.permute.xlu0 %491 }
  0xc7   : >> { %v510_v41 = vmul.f32 %v2490_v18, %v488_v26  ;;  %v511_v43 = vmul.f32 %v2494_v19, %v488_v26  ;;  %v441_v26 = vadd.f32 %v2445_v58, %v413_v50  ;;  %v512_v61 = vmul.f32 %v2490_v18, %v492_v27 }
  0xc8   : >> { %v513_v50 = vmul.f32 %v2494_v19, %v492_v27 }
  0xc9   : >> { %2006 = vset.pattern.permute.xlu0 %v3295_v51  ;;  %v518_v20 = vadd.f32 %v510_v41, %v478_v30  ;;  %v472_v51 = vmul.f32 %v2481_v16, %v452_v2  ;;  %v485_v41 = vadd.f32 %v477_v52, %v445_v56 }
  0xca   : >> { %1992 = vset.pattern.permute.xlu1 %v2160_v31  ;;  %v2518_v53 = vpop.permute.xlu1 %495  ;;  %1247 = vperm.xlu0 %2006, %v2324_v11   ;;  %v519_v31 = vadd.f32 %v511_v43, %v479_v34  ;;  %v484_v34 = vadd.f32 %v476_v7, %v444_v32  ;;  %v2547_v32 = vrot.slane %v2455_v63, %v2522_v54 }
  0xcb   : >> { %967 = vperm.xlu1 %1992, %v2324_v11   ;;  %v528_v8 = vpop.permute.xlu0 %527  ;;  %v2551_v7 = vrot.slane %v2457_v0, %v2522_v54  ;;  %v480_v52 = vadd.f32 %v472_v51, %v440_v23 }
  0xcc   : >> { %v550_v21 = vmul.f32 %v2506_v28, %v528_v8  ;;  %v551_v22 = vmul.f32 %v2510_v29, %v528_v8 }
  0xcd   : >> { %v520_v56 = vadd.f32 %v512_v61, %v480_v52  ;;  %v2565_v61 = vsub.s32 5, %v2401_v35 }
  0xce   : >> { %v558_v3 = vadd.f32 %v550_v21, %v518_v20  ;;  %v559_v24 = vadd.f32 %v551_v22, %v519_v31  ;;  %v500_v30 = vpop.permute.xlu1 %499  ;;  %1259 = vperm.xlu0 %2006, %v2331_v12   ;;  %v481_v20 = vadd.f32 %v473_v14, %v441_v26  ;;  %v3301_v31 = vmov 22  }
  0xcf   : >> { %v516_v43 = vmul.f32 %v2490_v18, %v500_v30  ;;  %v517_v46 = vmul.f32 %v2494_v19, %v500_v30  ;;  %975 = vperm.xlu1 %1992, %v2336_v13   ;;  %v540_v58 = vpop.permute.xlu0 %539 }
  0xd0   : >> { %v556_v2 = vmul.f32 %v2506_v28, %v540_v58  ;;  %v557_v59 = vmul.f32 %v2510_v29, %v540_v58  ;;  %v521_v30 = vadd.f32 %v513_v50, %v481_v20  ;;  %v3300_v58 = vmov 23  }
  0xd1   : >> { %v524_v4 = vadd.f32 %v516_v43, %v484_v34  ;;  %v525_v8 = vadd.f32 %v517_v46, %v485_v41 }
  0xd2   : >> { %2009 = vset.pattern.permute.xlu0 %v3301_v31 }
  0xd3   : >> { %v564_v27 = vadd.f32 %v556_v2, %v524_v4  ;;  %v565_v21 = vadd.f32 %v557_v59, %v525_v8  ;;  %979 = vperm.xlu1 %1992, %v2331_v12   ;;  %v532_v22 = vpop.permute.xlu1 %531  ;;  %1291 = vperm.xlu0 %2009, %v2319_v10   ;;  %v2571_v59 = vrot.slane %v2455_v63, %v2565_v61 }
  0xd4   : >> { %v552_v34 = vmul.f32 %v2506_v28, %v532_v22  ;;  %v553_v41 = vmul.f32 %v2510_v29, %v532_v22  ;;  %v572_v43 = vpop.permute.xlu0 %571 }
  0xd5   : >> { %v592_v51 = vmul.f32 %v2547_v32, %v572_v43  ;;  %v593_v23 = vmul.f32 %v2551_v7, %v572_v43 }
  0xd6   : >> { %v560_v26 = vadd.f32 %v552_v34, %v520_v56  ;;  %v561_v14 = vadd.f32 %v553_v41, %v521_v30 }
  0xd7   : >> { %1995 = vset.pattern.permute.xlu1 %v2161_v36  ;;  %v2561_v46 = vpop.permute.xlu1 %535  ;;  %2010 = vset.pattern.permute.xlu0 %v3300_v58  ;;  %v2575_v36 = vrot.slane %v2457_v0, %v2565_v61 }
  0xd8   : >> { %v600_v50 = vadd.f32 %v592_v51, %v560_v26  ;;  %v601_v2 = vadd.f32 %v593_v23, %v561_v14  ;;  %1011 = vperm.xlu1 %1995, %v2319_v10   ;;  %1327 = vperm.xlu0 %2010, %v2324_v11   ;;  %v3299_v23 = vmov 24  }
  0xd9   : >> { %v608_v8 = vpop.permute.xlu0 %607 }
  0xda   : >> { %v630_v22 = vmul.f32 %v2571_v59, %v608_v8  ;;  %v631_v56 = vmul.f32 %v2575_v36, %v608_v8 }
  0xdc   : >> { %1015 = vperm.xlu1 %1995, %v2336_v13   ;;  %v568_v4 = vpop.permute.xlu1 %567  ;;  %1339 = vperm.xlu0 %2010, %v2331_v12  }
  0xdd   : >> { %v590_v52 = vmul.f32 %v2547_v32, %v568_v4  ;;  %v591_v20 = vmul.f32 %v2551_v7, %v568_v4  ;;  %v620_v26 = vpop.permute.xlu0 %619  ;;  %v2590_v4 = vsub.s32 6, %v2401_v35 }
  0xdf   : >> { %v598_v30 = vadd.f32 %v590_v52, %v558_v3  ;;  %v599_v34 = vadd.f32 %v591_v20, %v559_v24  ;;  %v636_v3 = vmul.f32 %v2571_v59, %v620_v26  ;;  %v2598_v52 = vrot.slane %v2455_v63, %v2590_v4 }
  0xe0   : >> { %1996 = vset.pattern.permute.xlu1 %v2162_v48  ;;  %v2584_v41 = vpop.permute.xlu1 %575  ;;  %2013 = vset.pattern.permute.xlu0 %v3299_v23  ;;  %v637_v48 = vmul.f32 %v2575_v36, %v620_v26  ;;  %v2602_v20 = vrot.slane %v2457_v0, %v2590_v4 }
  0xe1   : >> { %v638_v43 = vadd.f32 %v630_v22, %v598_v30  ;;  %v639_v51 = vadd.f32 %v631_v56, %v599_v34  ;;  %1047 = vperm.xlu1 %1996, %v2324_v11   ;;  %1371 = vperm.xlu0 %2013, %v2319_v10   ;;  %v3310_v22 = vmov 25   ;;  %v332_v34 = vmul.f32 %v2424_v44, %v2411_v38 }
  0xe2   : >> { %v652_v26 = vpop.permute.xlu0 %651 }
  0xe3   : >> { %v672_v31 = vmul.f32 %v2598_v52, %v652_v26  ;;  %v673_v1 = vmul.f32 %v2602_v20, %v652_v26 }
  0xe4   : >> { %v580_v14 = vpop.permute.xlu1 %579 }
  0xe5   : >> { %v596_v24 = vmul.f32 %v2547_v32, %v580_v14  ;;  %v597_v8 = vmul.f32 %v2551_v7, %v580_v14  ;;  %1055 = vperm.xlu1 %1996, %v2336_v13   ;;  %2014 = vset.pattern.permute.xlu0 %v3310_v22 }
  0xe6   : >> { %1407 = vperm.xlu0 %2014, %v2324_v11  }
  0xe7   : >> { %v604_v56 = vadd.f32 %v596_v24, %v564_v27  ;;  %v605_v30 = vadd.f32 %v597_v8, %v565_v21  ;;  %v333_v21 = vmul.f32 %v2427_v45, %v2411_v38 }
  0xe9   : >> { %v612_v14 = vpop.permute.xlu1 %611  ;;  %v644_v23 = vadd.f32 %v636_v3, %v604_v56  ;;  %v645_v58 = vadd.f32 %v637_v48, %v605_v30  ;;  %1059 = vperm.xlu1 %1996, %v2331_v12   ;;  %v2618_v3 = vsub.s32 7, %v2401_v35  ;;  %v360_v56 = vadd.f32 %v2420_v42, %v332_v34 }
  0xea   : >> { %v632_v60 = vmul.f32 %v2571_v59, %v612_v14  ;;  %v633_v27 = vmul.f32 %v2575_v36, %v612_v14  ;;  %1419 = vperm.xlu0 %2014, %v2331_v12   ;;  %v3306_v34 = vmov 27  }
  0xeb   : >> { %3355 = vst [vmem:[#allocation17_spill] sm:$0xff] %v2618_v3  ;;  %v2626_v14 = vrot.slane %v2455_v63, %v2618_v3  ;;  %v2630_v38 = vrot.slane %v2457_v0, %v2618_v3  ;;  %2042 = vtanh.f32 %v360_v56 }
  0xec   : >> { %v640_v24 = vadd.f32 %v632_v60, %v600_v50  ;;  %v641_v8 = vadd.f32 %v633_v27, %v601_v2  ;;  %v3308_v60 = vmov 26   ;;  %v361_v50 = vadd.f32 %v2420_v42, %v333_v21 }
  0xed   : >> { %v2620_v48 = vpop.permute.xlu1 %615  ;;  %1999 = vset.pattern.permute.xlu1 %v2163_v55  ;;  %v688_v55 = vpop.permute.xlu0 %687 }
  0xee   : >> { %v680_v30 = vadd.f32 %v672_v31, %v640_v24  ;;  %v681_v26 = vadd.f32 %v673_v1, %v641_v8  ;;  %1091 = vperm.xlu1 %1999, %v2319_v10   ;;  %2017 = vset.pattern.permute.xlu0 %v3308_v60  ;;  %v710_v31 = vmul.f32 %v2626_v14, %v688_v55  ;;  %2044 = vtanh.f32 %v361_v50 }
  0xef   : >> { %1451 = vperm.xlu0 %2017, %v2319_v10   ;;  %v711_v63 = vmul.f32 %v2630_v38, %v688_v55  ;;  %v3356_v24 = vmov 18   ;;  %v3304_v55 = vmov 28  }
  0xf2   : >> { %v648_v1 = vpop.permute.xlu1 %647  ;;  %1095 = vperm.xlu1 %1999, %v2336_v13  }
  0xf3   : >> { %v670_v0 = vmul.f32 %v2598_v52, %v648_v1  ;;  %v671_v2 = vmul.f32 %v2602_v20, %v648_v1  ;;  %2019 = vset.pattern.permute.xlu0 %v3306_v34  ;;  %v700_v1 = vpop.permute.xlu0 %699 }
  0xf4   : >> { %1491 = vperm.xlu0 %2019, %v2319_v10  }
  0xf5   : >> { %v678_v42 = vadd.f32 %v670_v0, %v638_v43  ;;  %v679_v27 = vadd.f32 %v671_v2, %v639_v51  ;;  %v716_v43 = vmul.f32 %v2626_v14, %v700_v1  ;;  %v717_v51 = vmul.f32 %v2630_v38, %v700_v1 }
  0xf6   : >> { %v2643_v21 = vpop.permute.xlu1 %655  ;;  %2000 = vset.pattern.permute.xlu1 %v3356_v24  ;;  %v2653_v24 = vpop.eup %2042 }
  0xf7   : >> { %v718_v8 = vadd.f32 %v710_v31, %v678_v42  ;;  %v719_v56 = vadd.f32 %v711_v63, %v679_v27  ;;  %1127 = vperm.xlu1 %2000, %v2324_v11   ;;  %v732_v60 = vpop.permute.xlu0 %731  ;;  %v2664_v22 = vrot.slane %v2653_v24, %v2414_v39 }
  0xf8   : >> { %2022 = vset.pattern.permute.xlu0 %v3304_v55  ;;  %v2656_v42 = vpop.eup %2044 }
  0xf9   : >> { %1527 = vperm.xlu0 %2022, %v2324_v11  }
  0xfa   : >> { %v660_v50 = vpop.permute.xlu1 %659 }
  0xfb   : >> { %v676_v0 = vmul.f32 %v2598_v52, %v660_v50  ;;  %v677_v2 = vmul.f32 %v2602_v20, %v660_v50  ;;  %1135 = vperm.xlu1 %2000, %v2336_v13  }
  0xfd   : >> { %v684_v31 = vadd.f32 %v676_v0, %v644_v23  ;;  %v685_v63 = vadd.f32 %v677_v2, %v645_v58  ;;  %1535 = vperm.xlu0 %2022, %v2336_v13   ;;  %v2668_v58 = vrot.slane %v2656_v42, %v2414_v39  ;;  %v3315_v2 = vmov 29  }
  0xff   : >> { %v692_v27 = vpop.permute.xlu1 %691  ;;  %v724_v55 = vadd.f32 %v716_v43, %v684_v31  ;;  %v725_v34 = vadd.f32 %v717_v51, %v685_v63  ;;  %1139 = vperm.xlu1 %2000, %v2331_v12   ;;  %v752_v43 = vmul.f32 %v2664_v22, %v732_v60  ;;  %v753_v51 = vmul.f32 %v2668_v58, %v732_v60 }
 0x100   : >> { %v712_v1 = vmul.f32 %v2626_v14, %v692_v27  ;;  %v713_v50 = vmul.f32 %v2630_v38, %v692_v27  ;;  %v3357_v63 = vmov 19  }
 0x101   : >> { %2026 = vset.pattern.permute.xlu0 %v3315_v2  ;;  %v3360_v2 = vmov 20  }
 0x102   : >> { %v720_v23 = vadd.f32 %v712_v1, %v680_v30  ;;  %v721_v0 = vadd.f32 %v713_v50, %v681_v26  ;;  %1571 = vperm.xlu0 %2026, %v2319_v10   ;;  %v768_v26 = vpop.permute.xlu0 %767  ;;  %v2685_v50 = vrot.slane %v2653_v24, %v2417_v40 }
 0x103   : >> { %v2674_v31 = vpop.permute.xlu1 %695  ;;  %2003 = vset.pattern.permute.xlu1 %v3357_v63 }
 0x104   : >> { %1171 = vperm.xlu1 %2003, %v2319_v10   ;;  %v760_v27 = vadd.f32 %v752_v43, %v720_v23  ;;  %v761_v35 = vadd.f32 %v753_v51, %v721_v0  ;;  %3358 = vst [vmem:[#allocation18_spill] sm:$0xff] %v2685_v50  ;;  %v2689_v23 = vrot.slane %v2656_v42, %v2417_v40 }
 0x105   : >> { %v790_v51 = vmul.f32 %v2685_v50, %v768_v26  ;;  %v2708_v40 = vrot.slane %v2653_v24, %v2477_v15 }
 0x106   : >> { %2029 = vset.pattern.permute.xlu0 %v3313_v47  ;;  %3359 = vst [vmem:[#allocation19_spill] sm:$0xff] %v2689_v23  ;;  %v791_v63 = vmul.f32 %v2689_v23, %v768_v26  ;;  %v780_v39 = vpop.permute.xlu0 %779 }
 0x107   : >> { %1607 = vperm.xlu0 %2029, %v2324_v11   ;;  %v796_v26 = vmul.f32 %v2685_v50, %v780_v39 }
 0x108   : >> { %v728_v30 = vpop.permute.xlu1 %727  ;;  %1175 = vperm.xlu1 %2003, %v2336_v13  }
 0x109   : >> { %v750_v60 = vmul.f32 %v2664_v22, %v728_v30  ;;  %v751_v1 = vmul.f32 %v2668_v58, %v728_v30 }
 0x10b   : >> { %v758_v0 = vadd.f32 %v750_v60, %v718_v8  ;;  %v759_v43 = vadd.f32 %v751_v1, %v719_v56  ;;  %1615 = vperm.xlu0 %2029, %v2336_v13  }
 0x10c   : >> { %v2694_v47 = vpop.permute.xlu1 %735  ;;  %2004 = vset.pattern.permute.xlu1 %v3360_v2  ;;  %v797_v2 = vmul.f32 %v2689_v23, %v780_v39 }
 0x10d   : >> { %1207 = vperm.xlu1 %2004, %v2324_v11   ;;  %v798_v30 = vadd.f32 %v790_v51, %v758_v0  ;;  %v799_v37 = vadd.f32 %v791_v63, %v759_v43  ;;  %v812_v43 = vpop.permute.xlu0 %811 }
 0x10f   : >> { %2033 = vset.pattern.permute.xlu0 %v3321_v49 }
 0x110   : >> { %v740_v8 = vpop.permute.xlu1 %739  ;;  %1651 = vperm.xlu0 %2033, %v2319_v10  }
 0x111   : >> { %v756_v56 = vmul.f32 %v2664_v22, %v740_v8  ;;  %v757_v60 = vmul.f32 %v2668_v58, %v740_v8  ;;  %1215 = vperm.xlu1 %2004, %v2336_v13   ;;  %v2712_v8 = vrot.slane %v2656_v42, %v2477_v15  ;;  %v3362_v15 = vmov 21  }
 0x113   : >> { %v764_v1 = vadd.f32 %v756_v56, %v724_v55  ;;  %v765_v0 = vadd.f32 %v757_v60, %v725_v34  ;;  %v832_v55 = vmul.f32 %v2708_v40, %v812_v43  ;;  %v833_v56 = vmul.f32 %v2712_v8, %v812_v43 }
 0x114   : >> { %1659 = vperm.xlu0 %2033, %v2331_v12  }
 0x115   : >> { %v772_v51 = vpop.permute.xlu1 %771  ;;  %v804_v63 = vadd.f32 %v796_v26, %v764_v1  ;;  %v805_v49 = vadd.f32 %v797_v2, %v765_v0  ;;  %1219 = vperm.xlu1 %2004, %v2331_v12   ;;  %v1695_v2 = vld [vmem:[%s3291_s5 + $0x8] sm:$0xff]  ;;  %v3361_v0 = vmov 0  }
 0x116   : >> { %v792_v39 = vmul.f32 %v2685_v50, %v772_v51  ;;  %v793_v34 = vmul.f32 %v2689_v23, %v772_v51  ;;  %v848_v51 = vpop.permute.xlu0 %847 }
 0x118   : >> { %v800_v60 = vadd.f32 %v792_v39, %v760_v27  ;;  %v801_v26 = vadd.f32 %v793_v34, %v761_v35  ;;  %2037 = vset.pattern.permute.xlu0 %v3361_v0  ;;  %v2729_v35 = vrot.slane %v2653_v24, %v2501_v25  ;;  %v2733_v27 = vrot.slane %v2656_v42, %v2501_v25 }
 0x119   : >> { %v2722_v1 = vpop.permute.xlu1 %775  ;;  %2007 = vset.pattern.permute.xlu1 %v3362_v15  ;;  %1706 = vperm.xlu0 %2037, %v1695_v2   ;;  %v3363_v2 = vmov 22  }
 0x11a   : >> { %v840_v45 = vadd.f32 %v832_v55, %v800_v60  ;;  %v841_v44 = vadd.f32 %v833_v56, %v801_v26  ;;  %1251 = vperm.xlu1 %2007, %v2319_v10   ;;  %v870_v39 = vmul.f32 %v2729_v35, %v848_v51  ;;  %v871_v34 = vmul.f32 %v2733_v27, %v848_v51  ;;  %v1698_v26 = vld [vmem:[#allocation2] sm:$0x1]  ;;  %v860_v3 = vpop.permute.xlu0 %859 }
 0x11d   : >> { %1747 = vperm.xlu0 %2037, %v1698_v26  }
 0x11e   : >> { %v808_v33 = vpop.permute.xlu1 %807  ;;  %1255 = vperm.xlu1 %2007, %v2336_v13  }
 0x11f   : >> { %v830_v43 = vmul.f32 %v2708_v40, %v808_v33  ;;  %v831_v15 = vmul.f32 %v2712_v8, %v808_v33 }
 0x121   : >> { %v838_v55 = vadd.f32 %v830_v43, %v798_v30  ;;  %v839_v56 = vadd.f32 %v831_v15, %v799_v37  ;;  %v876_v37 = vmul.f32 %v2729_v35, %v860_v3  ;;  %v877_v30 = vmul.f32 %v2733_v27, %v860_v3 }
 0x122   : >> { %v2740_v60 = vpop.permute.xlu1 %815  ;;  %2008 = vset.pattern.permute.xlu1 %v3363_v2  ;;  %v414_v15 = vmul.f32 %v2464_v5, %v2442_v57  ;;  %v2763_v3 = vrot.slane %v2656_v42, %v2522_v54 }
 0x123   : >> { %v878_v0 = vadd.f32 %v870_v39, %v838_v55  ;;  %v879_v25 = vadd.f32 %v871_v34, %v839_v56  ;;  %1287 = vperm.xlu1 %2008, %v2324_v11   ;;  %v415_v11 = vmul.f32 %v2468_v6, %v2442_v57  ;;  %v892_v39 = vpop.permute.xlu0 %891 }
 0x124   : >> { %v913_v6 = vmul.f32 %v2763_v3, %v892_v39  ;;  %v442_v26 = vadd.f32 %v2452_v62, %v414_v15 }
 0x125   : >> { %v443_v2 = vadd.f32 %v2452_v62, %v415_v11 }
 0x126   : >> { %v820_v23 = vpop.permute.xlu1 %819 }
 0x127   : >> { %v836_v33 = vmul.f32 %v2708_v40, %v820_v23  ;;  %v837_v50 = vmul.f32 %v2712_v8, %v820_v23  ;;  %1295 = vperm.xlu1 %2008, %v2336_v13   ;;  %v2759_v23 = vrot.slane %v2653_v24, %v2522_v54 }
 0x129   : >> { %v844_v51 = vadd.f32 %v836_v33, %v804_v63  ;;  %v845_v43 = vadd.f32 %v837_v50, %v805_v49  ;;  %v912_v5 = vmul.f32 %v2759_v23, %v892_v39  ;;  %v2794_v39 = vrot.slane %v2653_v24, %v2565_v61 }
 0x12b   : >> { %v852_v34 = vpop.permute.xlu1 %851  ;;  %v2753_v55 = vadd.f32 %v876_v37, %v844_v51  ;;  %v2755_v56 = vadd.f32 %v877_v30, %v845_v43  ;;  %1299 = vperm.xlu1 %2008, %v2331_v12   ;;  %v474_v37 = vmul.f32 %v2481_v16, %v2474_v9  ;;  %v475_v12 = vmul.f32 %v2485_v17, %v2474_v9  ;;  %v928_v17 = vpop.permute.xlu0 %927 }
 0x12c   : >> { %v872_v49 = vmul.f32 %v2729_v35, %v852_v34  ;;  %v873_v57 = vmul.f32 %v2733_v27, %v852_v34  ;;  %v3364_v30 = vmov 23   ;;  %v554_v16 = vmul.f32 %v2506_v28, %v2561_v46 }
 0x12d   : >> { %v482_v62 = vadd.f32 %v474_v37, %v442_v26  ;;  %v483_v15 = vadd.f32 %v475_v12, %v443_v2  ;;  %v555_v9 = vmul.f32 %v2510_v29, %v2561_v46  ;;  %v594_v29 = vmul.f32 %v2547_v32, %v2584_v41 }
 0x12e   : >> { %v880_v50 = vadd.f32 %v872_v49, %v840_v45  ;;  %v881_v63 = vadd.f32 %v873_v57, %v841_v44  ;;  %v514_v44 = vmul.f32 %v2490_v18, %v2518_v53  ;;  %v515_v45 = vmul.f32 %v2494_v19, %v2518_v53 }
 0x12f   : >> { %v2772_v33 = vpop.permute.xlu1 %855  ;;  %2011 = vset.pattern.permute.xlu1 %v3364_v30  ;;  %v595_v46 = vmul.f32 %v2551_v7, %v2584_v41  ;;  %v950_v34 = vmul.f32 %v2794_v39, %v928_v17  ;;  %v3365_v32 = vmov 24   ;;  %v714_v30 = vmul.f32 %v2626_v14, %v2674_v31  ;;  %v2843_v14 = vld [vmem:[%s3289_s3 + $0x10] sm:$0xff] }
 0x130   : >> { %v2779_v51 = vadd.f32 %v912_v5, %v880_v50  ;;  %v2781_v43 = vadd.f32 %v913_v6, %v881_v63  ;;  %1331 = vperm.xlu1 %2011, %v2319_v10   ;;  %v2798_v10 = vrot.slane %v2656_v42, %v2565_v61  ;;  %v522_v28 = vadd.f32 %v514_v44, %v482_v62 }
 0x131   : >> { %v523_v53 = vadd.f32 %v515_v45, %v483_v15  ;;  %v634_v50 = vmul.f32 %v2571_v59, %v2620_v48  ;;  %v635_v63 = vmul.f32 %v2575_v36, %v2620_v48  ;;  %v940_v59 = vpop.permute.xlu0 %939  ;;  %v2827_v36 = vld [vmem:[%s3289_s3] sm:$0xff]  ;;  %v715_v44 = vmul.f32 %v2630_v38, %v2674_v31 }
 0x132   : >> { %v951_v49 = vmul.f32 %v2798_v10, %v928_v17  ;;  %v562_v6 = vadd.f32 %v554_v16, %v522_v28  ;;  %v754_v15 = vmul.f32 %v2664_v22, %v2694_v47  ;;  %v755_v16 = vmul.f32 %v2668_v58, %v2694_v47 }
 0x133   : >> { %v956_v38 = vmul.f32 %v2794_v39, %v940_v59  ;;  %v957_v31 = vmul.f32 %v2798_v10, %v940_v59  ;;  %v2852_v47 = vrot.slane %v2653_v24, %v2590_v4  ;;  %v2856_v58 = vrot.slane %v2656_v42, %v2590_v4 }
 0x134   : >> { %v888_v11 = vpop.permute.xlu1 %887  ;;  %1335 = vperm.xlu1 %2011, %v2336_v13   ;;  %v563_v13 = vadd.f32 %v555_v9, %v523_v53  ;;  %v602_v41 = vadd.f32 %v594_v29, %v562_v6  ;;  %v3367_v53 = vld [vmem:[#allocation19_spill] sm:$0xff]  ;;  %v874_v59 = vmul.f32 %v2729_v35, %v2772_v33 }
 0x135   : >> { %v910_v18 = vmul.f32 %v2759_v23, %v888_v11  ;;  %v911_v19 = vmul.f32 %v2763_v3, %v888_v11  ;;  %v795_v29 = vmul.f32 %v3367_v53, %v2722_v1 }
 0x136   : >> { %v603_v37 = vadd.f32 %v595_v46, %v563_v13  ;;  %v642_v48 = vadd.f32 %v634_v50, %v602_v41  ;;  %v834_v50 = vmul.f32 %v2708_v40, %v2740_v60 }
 0x137   : >> { %v918_v57 = vadd.f32 %v910_v18, %v878_v0  ;;  %v919_v5 = vadd.f32 %v911_v19, %v879_v25  ;;  %v674_v25 = vmul.f32 %v2598_v52, %v2643_v21  ;;  %v675_v0 = vmul.f32 %v2602_v20, %v2643_v21  ;;  %v972_v18 = vpop.permute.xlu0 %971  ;;  %v3366_v19 = vld [vmem:[#allocation18_spill] sm:$0xff] }
 0x138   : >> { %v2813_v26 = vpop.permute.xlu1 %895  ;;  %2012 = vset.pattern.permute.xlu1 %v3365_v32  ;;  %v643_v12 = vadd.f32 %v635_v63, %v603_v37  ;;  %v794_v28 = vmul.f32 %v3366_v19, %v2722_v1  ;;  %v992_v1 = vmul.f32 %v2852_v47, %v972_v18  ;;  %v993_v13 = vmul.f32 %v2856_v58, %v972_v18 }
 0x139   : >> { %v2816_v2 = vadd.f32 %v950_v34, %v918_v57  ;;  %v2818_v7 = vadd.f32 %v951_v49, %v919_v5  ;;  %1367 = vperm.xlu1 %2012, %v2827_v36   ;;  %v682_v21 = vadd.f32 %v674_v25, %v642_v48  ;;  %v2869_v34 = vld [vmem:[%s3289_s3 + $0x18] sm:$0xff]  ;;  %v835_v63 = vmul.f32 %v2712_v8, %v2740_v60  ;;  %v2890_v8 = vld [vmem:[%s3289_s3 + $0x8] sm:$0xff] }
 0x13a   : >> { %v683_v62 = vadd.f32 %v675_v0, %v643_v12  ;;  %v875_v48 = vmul.f32 %v2733_v27, %v2772_v33  ;;  %v3368_v12 = vmov 25   ;;  %v915_v35 = vmul.f32 %v2763_v3, %v2813_v26 }
 0x13b   : >> { %v722_v11 = vadd.f32 %v714_v30, %v682_v21  ;;  %v1008_v27 = vpop.permute.xlu0 %1007  ;;  %v3369_v21 = vld [vmem:[#allocation17_spill] sm:$0xff] }
 0x13c   : >> { %v900_v52 = vpop.permute.xlu1 %899  ;;  %v723_v22 = vadd.f32 %v715_v44, %v683_v62  ;;  %v1025_v62 = vrot.slane %v2653_v24, %v3369_v21 }
 0x13d   : >> { %v916_v45 = vmul.f32 %v2759_v23, %v900_v52  ;;  %v917_v20 = vmul.f32 %v2763_v3, %v900_v52  ;;  %1375 = vperm.xlu1 %2012, %v2843_v14   ;;  %v762_v5 = vadd.f32 %v754_v15, %v722_v11  ;;  %v1029_v15 = vrot.slane %v2656_v42, %v3369_v21 }
 0x13e   : >> { %v763_v6 = vadd.f32 %v755_v16, %v723_v22  ;;  %v3371_v16 = vld [vmem:[#allocation11_spill] sm:$0xff]  ;;  %v3373_v22 = vld [vmem:[#allocation14_spill] sm:$0xff] }
 0x13f   : >> { %v924_v9 = vadd.f32 %v916_v45, %v2753_v55  ;;  %v925_v17 = vadd.f32 %v917_v20, %v2755_v56  ;;  %v802_v37 = vadd.f32 %v794_v28, %v762_v5  ;;  %v1031_v11 = vmul.f32 %v1029_v15, %v1008_v27 }
 0x140   : >> { %v803_v25 = vadd.f32 %v795_v29, %v763_v6 }
 0x141   : >> { %v932_v55 = vpop.permute.xlu1 %931  ;;  %v2862_v46 = vadd.f32 %v956_v38, %v924_v9  ;;  %v2864_v56 = vadd.f32 %v957_v31, %v925_v17  ;;  %1379 = vperm.xlu1 %2012, %v2869_v34   ;;  %v842_v60 = vadd.f32 %v834_v50, %v802_v37  ;;  %v1030_v17 = vmul.f32 %v1025_v62, %v1008_v27 }
 0x142   : >> { %v952_v49 = vmul.f32 %v2794_v39, %v932_v55  ;;  %v953_v57 = vmul.f32 %v2798_v10, %v932_v55  ;;  %v3374_v55 = vmov 26  }
 0x143   : >> { %v882_v33 = vadd.f32 %v874_v59, %v842_v60 }
 0x144   : >> { %v960_v32 = vadd.f32 %v952_v49, %v2779_v51  ;;  %v961_v41 = vadd.f32 %v953_v57, %v2781_v43  ;;  %v843_v51 = vadd.f32 %v835_v63, %v803_v25  ;;  %v914_v43 = vmul.f32 %v2759_v23, %v2813_v26  ;;  %v3370_v26 = vld [vmem:[#allocation6_spill] sm:$0xff] }
 0x145   : >> { %v936_v0 = vpop.permute.xlu1 %935  ;;  %2015 = vset.pattern.permute.xlu1 %v3368_v12  ;;  %v334_v38 = vmul.f32 %v3371_v16, %v3370_v26  ;;  %v3375_v12 = vmov 27  }
 0x146   : >> { %v1000_v30 = vadd.f32 %v992_v1, %v960_v32  ;;  %v1001_v40 = vadd.f32 %v993_v13, %v961_v41  ;;  %1411 = vperm.xlu1 %2015, %v2890_v8   ;;  %v883_v44 = vadd.f32 %v875_v48, %v843_v51  ;;  %v954_v52 = vmul.f32 %v2794_v39, %v936_v0  ;;  %v3372_v39 = vld [vmem:[#allocation12_spill] sm:$0xff] }
 0x147   : >> { %v955_v45 = vmul.f32 %v2798_v10, %v936_v0  ;;  %v335_v31 = vmul.f32 %v3372_v39, %v3370_v26  ;;  %v922_v10 = vadd.f32 %v914_v43, %v882_v33  ;;  %v362_v18 = vadd.f32 %v3373_v22, %v334_v38 }
 0x148   : >> { %v923_v9 = vadd.f32 %v915_v35, %v883_v44 }
 0x149   : >> { %v363_v19 = vadd.f32 %v3373_v22, %v335_v31  ;;  %v962_v28 = vadd.f32 %v954_v52, %v922_v10  ;;  %2046 = vtanh.f32 %v362_v18  ;;  %v3376_v52 = vld [vmem:[#allocation9_spill] sm:$0xff]  ;;  %v3377_v31 = vmov 28  }
 0x14a   : >> { %v968_v20 = vpop.permute.xlu1 %967  ;;  %1415 = vperm.xlu1 %2015, %v2843_v14   ;;  %v963_v53 = vadd.f32 %v955_v45, %v923_v9 }
 0x14b   : >> { %v990_v23 = vmul.f32 %v2852_v47, %v968_v20  ;;  %v991_v3 = vmul.f32 %v2856_v58, %v968_v20  ;;  %2048 = vtanh.f32 %v363_v19 }
 0x14d   : >> { %v998_v24 = vadd.f32 %v990_v23, %v2816_v2  ;;  %v999_v42 = vadd.f32 %v991_v3, %v2818_v7  ;;  %v1020_v7 = vpop.permute.xlu0 %1019 }
 0x14e   : >> { %v976_v29 = vpop.permute.xlu1 %975  ;;  %2016 = vset.pattern.permute.xlu1 %v3374_v55  ;;  %v1036_v32 = vmul.f32 %v1025_v62, %v1020_v7  ;;  %v1037_v41 = vmul.f32 %v1029_v15, %v1020_v7 }
 0x14f   : >> { %v994_v49 = vmul.f32 %v2852_v47, %v976_v29  ;;  %v995_v57 = vmul.f32 %v2856_v58, %v976_v29  ;;  %v1038_v5 = vadd.f32 %v1030_v17, %v998_v24  ;;  %v1039_v6 = vadd.f32 %v1031_v11, %v999_v42  ;;  %1447 = vperm.xlu1 %2016, %v2827_v36  }
 0x151   : >> { %v1002_v2 = vadd.f32 %v994_v49, %v962_v28  ;;  %v1003_v1 = vadd.f32 %v995_v57, %v963_v53  ;;  %v1052_v11 = vpop.permute.xlu0 %1051  ;;  %v3378_v53 = vld [vmem:[#allocation10_spill] sm:$0xff] }
 0x152   : >> { %v980_v13 = vpop.permute.xlu1 %979 }
 0x153   : >> { %v996_v50 = vmul.f32 %v2852_v47, %v980_v13  ;;  %v997_v63 = vmul.f32 %v2856_v58, %v980_v13  ;;  %1455 = vperm.xlu1 %2016, %v2843_v14   ;;  %v2925_v35 = vpop.eup %2046  ;;  %v3379_v13 = vmov 29  }
 0x154   : >> { %v1065_v45 = vrot.slane %v2925_v35, %v3376_v52  ;;  %v1105_v29 = vrot.slane %v2925_v35, %v3378_v53 }
 0x155   : >> { %v1004_v37 = vadd.f32 %v996_v50, %v2862_v46  ;;  %v1005_v25 = vadd.f32 %v997_v63, %v2864_v56  ;;  %v2927_v44 = vpop.eup %2048  ;;  %v1088_v63 = vpop.permute.xlu0 %1087 }
 0x156   : >> { %v1072_v19 = vmul.f32 %v1065_v45, %v1052_v11 }
 0x157   : >> { %v1012_v0 = vpop.permute.xlu1 %1011  ;;  %v1044_v59 = vadd.f32 %v1036_v32, %v1004_v37  ;;  %v1045_v48 = vadd.f32 %v1037_v41, %v1005_v25  ;;  %2018 = vset.pattern.permute.xlu1 %v3375_v12 }
 0x158   : >> { %v1032_v60 = vmul.f32 %v1025_v62, %v1012_v0  ;;  %v1033_v51 = vmul.f32 %v1029_v15, %v1012_v0  ;;  %1487 = vperm.xlu1 %2018, %v2827_v36   ;;  %v1110_v0 = vmul.f32 %v1105_v29, %v1088_v63 }
 0x15a   : >> { %v1040_v47 = vadd.f32 %v1032_v60, %v1000_v30  ;;  %v1041_v43 = vadd.f32 %v1033_v51, %v1001_v40  ;;  %v1069_v30 = vrot.slane %v2927_v44, %v3376_v52 }
 0x15b   : >> { %v1016_v58 = vpop.permute.xlu1 %1015 }
 0x15c   : >> { %v1034_v27 = vmul.f32 %v1025_v62, %v1016_v58  ;;  %v1035_v33 = vmul.f32 %v1029_v15, %v1016_v58  ;;  %2020 = vset.pattern.permute.xlu1 %v3374_v55  ;;  %v1073_v28 = vmul.f32 %v1069_v30, %v1052_v11  ;;  %v1109_v55 = vrot.slane %v2927_v44, %v3378_v53 }
 0x15d   : >> { %1459 = vperm.xlu1 %2020, %v2869_v34   ;;  %v1080_v57 = vadd.f32 %v1072_v19, %v1040_v47 }
 0x15e   : >> { %v1042_v46 = vadd.f32 %v1034_v27, %v1002_v2  ;;  %v1043_v56 = vadd.f32 %v1035_v33, %v1003_v1  ;;  %v1100_v33 = vpop.permute.xlu0 %1099 }
 0x160   : >> { %v1048_v40 = vpop.permute.xlu1 %1047 }
 0x161   : >> { %v1070_v20 = vmul.f32 %v1065_v45, %v1048_v40  ;;  %v1071_v23 = vmul.f32 %v1069_v30, %v1048_v40  ;;  %2021 = vset.pattern.permute.xlu1 %v3375_v12 }
 0x162   : >> { %1495 = vperm.xlu1 %2021, %v2843_v14  }
 0x163   : >> { %v1078_v62 = vadd.f32 %v1070_v20, %v1038_v5  ;;  %v1079_v15 = vadd.f32 %v1071_v23, %v1039_v6  ;;  %v1081_v5 = vadd.f32 %v1073_v28, %v1041_v43  ;;  %v1116_v20 = vmul.f32 %v1105_v29, %v1100_v33  ;;  %v3382_v28 = vld [vmem:[#allocation16_spill] sm:$0xff] }
 0x164   : >> { %v1056_v3 = vpop.permute.xlu1 %1055  ;;  %v1117_v23 = vmul.f32 %v1109_v55, %v1100_v33 }
 0x165   : >> { %v1074_v26 = vmul.f32 %v1065_v45, %v1056_v3  ;;  %v1075_v38 = vmul.f32 %v1069_v30, %v1056_v3  ;;  %v1118_v47 = vadd.f32 %v1110_v0, %v1078_v62  ;;  %v1225_v0 = vrot.slane %v2925_v35, %v2522_v54 }
 0x166   : >> { %2023 = vset.pattern.permute.xlu1 %v3377_v31 }
 0x167   : >> { %v1082_v10 = vadd.f32 %v1074_v26, %v1042_v46  ;;  %v1083_v9 = vadd.f32 %v1075_v38, %v1043_v56  ;;  %1531 = vperm.xlu1 %2023, %v2890_v8  }
 0x168   : >> { %v1060_v17 = vpop.permute.xlu1 %1059 }
 0x169   : >> { %v1076_v24 = vmul.f32 %v1065_v45, %v1060_v17  ;;  %v1077_v42 = vmul.f32 %v1069_v30, %v1060_v17  ;;  %v3381_v17 = vmov 30  }
 0x16b   : >> { %v1084_v22 = vadd.f32 %v1076_v24, %v1044_v59  ;;  %v1085_v18 = vadd.f32 %v1077_v42, %v1045_v48  ;;  %2024 = vset.pattern.permute.xlu1 %v3375_v12  ;;  %v1111_v59 = vmul.f32 %v1109_v55, %v1088_v63  ;;  %v3380_v48 = vld [vmem:[#allocation15_spill] sm:$0xff] }
 0x16c   : >> { %1499 = vperm.xlu1 %2024, %v2869_v34   ;;  %v1145_v12 = vrot.slane %v2925_v35, %v3380_v48  ;;  %v1149_v60 = vrot.slane %v2927_v44, %v3380_v48 }
 0x16d   : >> { %v1092_v49 = vpop.permute.xlu1 %1091  ;;  %v1119_v43 = vadd.f32 %v1111_v59, %v1079_v15  ;;  %v1124_v62 = vadd.f32 %v1116_v20, %v1084_v22  ;;  %v1125_v15 = vadd.f32 %v1117_v23, %v1085_v18 }
 0x16e   : >> { %v1112_v6 = vmul.f32 %v1105_v29, %v1092_v49  ;;  %v1113_v2 = vmul.f32 %v1109_v55, %v1092_v49 }
 0x170   : >> { %v1120_v1 = vadd.f32 %v1112_v6, %v1080_v57  ;;  %v1121_v7 = vadd.f32 %v1113_v2, %v1081_v5  ;;  %2025 = vset.pattern.permute.xlu1 %v3379_v13 }
 0x171   : >> { %1567 = vperm.xlu1 %2025, %v2827_v36   ;;  %v1096_v50 = vpop.permute.xlu1 %1095 }
 0x172   : >> { %v1114_v32 = vmul.f32 %v1105_v29, %v1096_v50  ;;  %v1115_v41 = vmul.f32 %v1109_v55, %v1096_v50  ;;  %v1185_v29 = vrot.slane %v2925_v35, %v3382_v28  ;;  %v1189_v55 = vrot.slane %v2927_v44, %v3382_v28 }
 0x174   : >> { %v1122_v37 = vadd.f32 %v1114_v32, %v1082_v10  ;;  %v1123_v25 = vadd.f32 %v1115_v41, %v1083_v9  ;;  %v3383_v41 = vmov 31  }
 0x175   : >> { %2027 = vset.pattern.permute.xlu1 %v3377_v31  ;;  %v1132_v31 = vpop.permute.xlu0 %1131 }
 0x176   : >> { %1539 = vperm.xlu1 %2027, %v2869_v34   ;;  %v1128_v51 = vpop.permute.xlu1 %1127  ;;  %v1152_v42 = vmul.f32 %v1145_v12, %v1132_v31  ;;  %v1153_v19 = vmul.f32 %v1149_v60, %v1132_v31 }
 0x177   : >> { %v1150_v58 = vmul.f32 %v1145_v12, %v1128_v51  ;;  %v1151_v27 = vmul.f32 %v1149_v60, %v1128_v51 }
 0x178   : >> { %v1160_v57 = vadd.f32 %v1152_v42, %v1120_v1  ;;  %v1161_v22 = vadd.f32 %v1153_v19, %v1121_v7  ;;  %v3384_v42 = vmov 0  }
 0x179   : >> { %v1158_v46 = vadd.f32 %v1150_v58, %v1118_v47  ;;  %v1159_v56 = vadd.f32 %v1151_v27, %v1119_v43  ;;  %v1168_v50 = vpop.permute.xlu0 %1167 }
 0x17a   : >> { %2028 = vset.pattern.permute.xlu1 %v3379_v13  ;;  %v1136_v45 = vpop.permute.xlu1 %1135  ;;  %v1190_v1 = vmul.f32 %v1185_v29, %v1168_v50  ;;  %v1191_v7 = vmul.f32 %v1189_v55, %v1168_v50 }
 0x17b   : >> { %v1154_v30 = vmul.f32 %v1145_v12, %v1136_v45  ;;  %v1155_v40 = vmul.f32 %v1149_v60, %v1136_v45  ;;  %1575 = vperm.xlu1 %2028, %v2843_v14  }
 0x17d   : >> { %v1162_v3 = vadd.f32 %v1154_v30, %v1122_v37  ;;  %v1163_v26 = vadd.f32 %v1155_v40, %v1123_v25  ;;  %v1180_v43 = vpop.permute.xlu0 %1179 }
 0x17e   : >> { %v1140_v38 = vpop.permute.xlu1 %1139  ;;  %v1196_v30 = vmul.f32 %v1185_v29, %v1180_v43  ;;  %v1197_v40 = vmul.f32 %v1189_v55, %v1180_v43 }
 0x17f   : >> { %v1156_v10 = vmul.f32 %v1145_v12, %v1140_v38  ;;  %v1157_v9 = vmul.f32 %v1149_v60, %v1140_v38  ;;  %2030 = vset.pattern.permute.xlu1 %v3381_v17  ;;  %v1198_v12 = vadd.f32 %v1190_v1, %v1158_v46  ;;  %v1199_v60 = vadd.f32 %v1191_v7, %v1159_v56 }
 0x180   : >> { %1611 = vperm.xlu1 %2030, %v2890_v8  }
 0x181   : >> { %v1164_v11 = vadd.f32 %v1156_v10, %v1124_v62  ;;  %v1165_v24 = vadd.f32 %v1157_v9, %v1125_v15  ;;  %v1212_v56 = vpop.permute.xlu0 %1211 }
 0x182   : >> { %v1232_v10 = vmul.f32 %v1225_v0, %v1212_v56 }
 0x183   : >> { %v1172_v49 = vpop.permute.xlu1 %1171 }
 0x184   : >> { %v1192_v18 = vmul.f32 %v1185_v29, %v1172_v49  ;;  %v1193_v5 = vmul.f32 %v1189_v55, %v1172_v49  ;;  %2031 = vset.pattern.permute.xlu1 %v3379_v13  ;;  %v1229_v13 = vrot.slane %v2927_v44, %v2522_v54  ;;  %v1696_v49 = vld [vmem:[%s3291_s5 + $0x10] sm:$0xff] }
 0x185   : >> { %1579 = vperm.xlu1 %2031, %v2869_v34  }
 0x186   : >> { %v1200_v8 = vadd.f32 %v1192_v18, %v1160_v57  ;;  %v1201_v6 = vadd.f32 %v1193_v5, %v1161_v22  ;;  %v1233_v9 = vmul.f32 %v1229_v13, %v1212_v56  ;;  %v1248_v5 = vpop.permute.xlu0 %1247 }
 0x187   : >> { %v1176_v2 = vpop.permute.xlu1 %1175 }
 0x188   : >> { %v1194_v63 = vmul.f32 %v1185_v29, %v1176_v2  ;;  %v1195_v32 = vmul.f32 %v1189_v55, %v1176_v2  ;;  %v1241_v19 = vadd.f32 %v1233_v9, %v1201_v6 }
 0x189   : >> { %2032 = vset.pattern.permute.xlu1 %v3383_v41 }
 0x18a   : >> { %v1202_v37 = vadd.f32 %v1194_v63, %v1162_v3  ;;  %v1203_v25 = vadd.f32 %v1195_v32, %v1163_v26  ;;  %1647 = vperm.xlu1 %2032, %v2827_v36   ;;  %v1204_v3 = vadd.f32 %v1196_v30, %v1164_v11  ;;  %v1205_v26 = vadd.f32 %v1197_v40, %v1165_v24  ;;  %v1697_v63 = vld [vmem:[%s3291_s5 + $0x18] sm:$0xff] }
 0x18b   : >> { %v1240_v24 = vadd.f32 %v1232_v10, %v1200_v8  ;;  %v3005_v10 = vrot.slane %v2927_v44, %v3369_v21 }
 0x18c   : >> { %v1208_v59 = vpop.permute.xlu1 %1207 }
 0x18d   : >> { %v1230_v51 = vmul.f32 %v1225_v0, %v1208_v59  ;;  %v1231_v47 = vmul.f32 %v1229_v13, %v1208_v59 }
 0x18e   : >> { %2034 = vset.pattern.permute.xlu1 %v3381_v17  ;;  %v1265_v17 = vrot.slane %v2925_v35, %v2565_v61 }
 0x18f   : >> { %v1238_v58 = vadd.f32 %v1230_v51, %v1198_v12  ;;  %v1239_v27 = vadd.f32 %v1231_v47, %v1199_v60  ;;  %1619 = vperm.xlu1 %2034, %v2869_v34   ;;  %v1694_v34 = vld [vmem:[%s3291_s5] sm:$0xff]  ;;  %v1260_v12 = vpop.permute.xlu0 %1259 }
 0x190   : >> { %v1216_v36 = vpop.permute.xlu1 %1215  ;;  %v1270_v6 = vmul.f32 %v1265_v17, %v1248_v5 }
 0x191   : >> { %v1234_v33 = vmul.f32 %v1225_v0, %v1216_v36  ;;  %v1235_v45 = vmul.f32 %v1229_v13, %v1216_v36 }
 0x192   : >> { %v1278_v7 = vadd.f32 %v1270_v6, %v1238_v58 }
 0x193   : >> { %v1242_v20 = vadd.f32 %v1234_v33, %v1202_v37  ;;  %v1243_v23 = vadd.f32 %v1235_v45, %v1203_v25  ;;  %2035 = vset.pattern.permute.xlu1 %v3383_v41  ;;  %v1305_v37 = vrot.slane %v2925_v35, %v2590_v4  ;;  %v1309_v25 = vrot.slane %v2927_v44, %v2590_v4 }
 0x194   : >> { %1655 = vperm.xlu1 %2035, %v2843_v14   ;;  %v1220_v46 = vpop.permute.xlu1 %1219  ;;  %v1269_v14 = vrot.slane %v2927_v44, %v2565_v61  ;;  %v1276_v33 = vmul.f32 %v1265_v17, %v1260_v12 }
 0x195   : >> { %v1236_v38 = vmul.f32 %v1225_v0, %v1220_v46  ;;  %v1237_v31 = vmul.f32 %v1229_v13, %v1220_v46 }
 0x196   : >> { %v1271_v41 = vmul.f32 %v1269_v14, %v1248_v5  ;;  %v1277_v45 = vmul.f32 %v1269_v14, %v1260_v12 }
 0x197   : >> { %v1244_v62 = vadd.f32 %v1236_v38, %v1204_v3  ;;  %v1245_v15 = vadd.f32 %v1237_v31, %v1205_v26 }
 0x198   : >> { %2036 = vset.pattern.permute.xlu1 %v3384_v42  ;;  %v1279_v0 = vadd.f32 %v1271_v41, %v1239_v27 }
 0x199   : >> { %1701 = vperm.xlu1 %2036, %v1694_v34   ;;  %v1252_v11 = vpop.permute.xlu1 %1251  ;;  %v1284_v46 = vadd.f32 %v1276_v33, %v1244_v62  ;;  %v1285_v56 = vadd.f32 %v1277_v45, %v1245_v15  ;;  %v3001_v34 = vrot.slane %v2925_v35, %v3369_v21 }
 0x19a   : >> { %v1272_v29 = vmul.f32 %v1265_v17, %v1252_v11  ;;  %v1273_v55 = vmul.f32 %v1269_v14, %v1252_v11 }
 0x19c   : >> { %v1280_v57 = vadd.f32 %v1272_v29, %v1240_v24  ;;  %v1281_v22 = vadd.f32 %v1273_v55, %v1241_v19 }
 0x19d   : >> { %1711 = vperm.xlu1 %2036, %v1696_v49   ;;  %v1256_v18 = vpop.permute.xlu1 %1255 }
 0x19e   : >> { %v1274_v2 = vmul.f32 %v1265_v17, %v1256_v18  ;;  %v1275_v50 = vmul.f32 %v1269_v14, %v1256_v18 }
 0x1a0   : >> { %v1282_v32 = vadd.f32 %v1274_v2, %v1242_v20  ;;  %v1283_v8 = vadd.f32 %v1275_v50, %v1243_v23  ;;  %v1292_v23 = vpop.permute.xlu0 %1291 }
 0x1a1   : >> { %1716 = vperm.xlu1 %2036, %v1697_v63   ;;  %v1312_v38 = vmul.f32 %v1305_v37, %v1292_v23  ;;  %v1313_v31 = vmul.f32 %v1309_v25, %v1292_v23 }
 0x1a2   : >> { %v1288_v1 = vpop.permute.xlu1 %1287 }
 0x1a3   : >> { %v1310_v13 = vmul.f32 %v1305_v37, %v1288_v1  ;;  %v1311_v59 = vmul.f32 %v1309_v25, %v1288_v1  ;;  %v1320_v17 = vadd.f32 %v1312_v38, %v1280_v57  ;;  %v1321_v62 = vadd.f32 %v1313_v31, %v1281_v22 }
 0x1a4   : >> { %v1328_v29 = vpop.permute.xlu0 %1327 }
 0x1a5   : >> { %v2991_v60 = vadd.f32 %v1310_v13, %v1278_v7  ;;  %v2993_v51 = vadd.f32 %v1311_v59, %v1279_v0  ;;  %v3386_v13 = vld [vmem:[#allocation13_spill] sm:$0xff] }
 0x1a6   : >> { %v1296_v47 = vpop.permute.xlu1 %1295 }
 0x1a7   : >> { %v1314_v43 = vmul.f32 %v1305_v37, %v1296_v47  ;;  %v1315_v36 = vmul.f32 %v1309_v25, %v1296_v47 }
 0x1a8   : >> { %v1340_v57 = vpop.permute.xlu0 %1339 }
 0x1a9   : >> { %v1322_v30 = vadd.f32 %v1314_v43, %v1282_v32  ;;  %v1323_v40 = vadd.f32 %v1315_v36, %v1283_v8 }
 0x1aa   : >> { %v1300_v20 = vpop.permute.xlu1 %1299 }
 0x1ab   : >> { %v1316_v58 = vmul.f32 %v1305_v37, %v1300_v20  ;;  %v1317_v27 = vmul.f32 %v1309_v25, %v1300_v20  ;;  %v3385_v25 = vld [vmem:[#allocation8_spill] sm:$0xff] }
 0x1ac   : >> { %v1372_v5 = vpop.permute.xlu0 %1371  ;;  %v336_v1 = vmul.f32 %v3371_v16, %v3385_v25  ;;  %v337_v7 = vmul.f32 %v3372_v39, %v3385_v25 }
 0x1ad   : >> { %v2995_v3 = vadd.f32 %v1316_v58, %v1284_v46  ;;  %v2997_v26 = vadd.f32 %v1317_v27, %v1285_v56 }
 0x1ae   : >> { %v364_v59 = vadd.f32 %v3386_v13, %v336_v1  ;;  %v365_v12 = vadd.f32 %v3386_v13, %v337_v7  ;;  %v1356_v7 = vmul.f32 %v3001_v34, %v1340_v57  ;;  %v1357_v13 = vmul.f32 %v3005_v10, %v1340_v57 }
 0x1af   : >> { %v1332_v9 = vpop.permute.xlu1 %1331 }
 0x1b0   : >> { %v1352_v15 = vmul.f32 %v3001_v34, %v1332_v9  ;;  %v1353_v14 = vmul.f32 %v3005_v10, %v1332_v9  ;;  %v1408_v50 = vpop.permute.xlu0 %1407  ;;  %2050 = vtanh.f32 %v364_v59 }
 0x1b1   : >> { %2052 = vtanh.f32 %v365_v12 }
 0x1b2   : >> { %v3009_v42 = vadd.f32 %v1352_v15, %v1320_v17  ;;  %v3011_v11 = vadd.f32 %v1353_v14, %v1321_v62 }
 0x1b3   : >> { %v1336_v24 = vpop.permute.xlu1 %1335 }
 0x1b4   : >> { %v1354_v19 = vmul.f32 %v3001_v34, %v1336_v24  ;;  %v1355_v35 = vmul.f32 %v3005_v10, %v1336_v24  ;;  %v1420_v32 = vpop.permute.xlu0 %1419 }
 0x1b6   : >> { %v3015_v55 = vadd.f32 %v1354_v19, %v1322_v30  ;;  %v3017_v44 = vadd.f32 %v1355_v35, %v1323_v40  ;;  %v1351_v35 = vmul.f32 %v3005_v10, %v1328_v29 }
 0x1b8   : >> { %v1368_v49 = vpop.permute.xlu1 %1367  ;;  %v1452_v41 = vpop.permute.xlu0 %1451 }
 0x1ba   : >> { %v2051_v30 = vpop.eup %2050 }
 0x1bb   : >> { %v2053_v16 = vpop.eup %2052  ;;  %v3046_v39 = vrot.slane %v2051_v30, %v3376_v52  ;;  %v3052_v46 = vrot.slane %v2051_v30, %v3378_v53  ;;  %v3058_v58 = vrot.slane %v2051_v30, %v3380_v48  ;;  %v3064_v38 = vrot.slane %v2051_v30, %v3382_v28 }
 0x1bc   : >> { %v3019_v22 = vpop.permute.xlu1 %1375  ;;  %v1492_v0 = vpop.permute.xlu0 %1491  ;;  %v3049_v23 = vrot.slane %v2053_v16, %v3376_v52  ;;  %v3055_v56 = vrot.slane %v2053_v16, %v3378_v53  ;;  %v3061_v27 = vrot.slane %v2053_v16, %v3380_v48  ;;  %v3067_v31 = vrot.slane %v2053_v16, %v3382_v28 }
 0x1bd   : >> { %v3070_v9 = vrot.slane %v2051_v30, %v2522_v54  ;;  %v3073_v17 = vrot.slane %v2053_v16, %v2522_v54  ;;  %v3076_v53 = vrot.slane %v2051_v30, %v2565_v61  ;;  %v3079_v62 = vrot.slane %v2053_v16, %v2565_v61 }
 0x1be   : >> { %v3082_v48 = vrot.slane %v2051_v30, %v2590_v4  ;;  %v3085_v15 = vrot.slane %v2053_v16, %v2590_v4  ;;  %v1392_v28 = vmul.f32 %v3046_v39, %v1372_v5  ;;  %v3089_v14 = vrot.slane %v2051_v30, %v3369_v21 }
 0x1bf   : >> { %v3092_v54 = vrot.slane %v2053_v16, %v3369_v21  ;;  %v1350_v61 = vmul.f32 %v3001_v34, %v1328_v29  ;;  %v1393_v25 = vmul.f32 %v3049_v23, %v1372_v5  ;;  %v1390_v21 = vmul.f32 %v3046_v39, %v1368_v49 }
 0x1c0   : >> { %v3021_v18 = vpop.permute.xlu1 %1379  ;;  %v1528_v43 = vpop.permute.xlu0 %1527  ;;  %v1400_v59 = vadd.f32 %v1392_v28, %v3009_v42  ;;  %v1430_v12 = vmul.f32 %v3052_v46, %v1408_v50  ;;  %v1431_v30 = vmul.f32 %v3055_v56, %v1408_v50  ;;  %v1391_v16 = vmul.f32 %v3049_v23, %v1368_v49 }
 0x1c1   : >> { %3387 = vst [vmem:[#allocation18_spill] sm:$0xff] %v3092_v54  ;;  %v1401_v29 = vadd.f32 %v1393_v25, %v3011_v11  ;;  %v3110_v5 = vmul.f32 %v3052_v46, %v1420_v32  ;;  %v1358_v34 = vadd.f32 %v1350_v61, %v2991_v60  ;;  %v1472_v57 = vmul.f32 %v3058_v58, %v1452_v41 }
 0x1c2   : >> { %v1473_v42 = vmul.f32 %v3061_v27, %v1452_v41  ;;  %v1359_v28 = vadd.f32 %v1351_v35, %v2993_v51  ;;  %v1512_v11 = vmul.f32 %v3064_v38, %v1492_v0  ;;  %v1513_v49 = vmul.f32 %v3067_v31, %v1492_v0 }
 0x1c3   : >> { %v1550_v25 = vmul.f32 %v3070_v9, %v1528_v43  ;;  %v1551_v54 = vmul.f32 %v3073_v17, %v1528_v43 }
 0x1c4   : >> { %v1536_v33 = vpop.permute.xlu0 %1535  ;;  %v1399_v51 = vadd.f32 %v1391_v16, %v1359_v28  ;;  %v1394_v16 = vmul.f32 %v3046_v39, %v3019_v22  ;;  %v1396_v28 = vmul.f32 %v3046_v39, %v3021_v18  ;;  %v1365_v39 = vadd.f32 %v1357_v13, %v2997_v26 }
 0x1c5   : >> { %v1412_v2 = vpop.permute.xlu1 %1411  ;;  %v3126_v60 = vmul.f32 %v3070_v9, %v1536_v33 }
 0x1c6   : >> { %v1432_v24 = vmul.f32 %v3052_v46, %v1412_v2  ;;  %v1433_v1 = vmul.f32 %v3055_v56, %v1412_v2  ;;  %v3113_v2 = vmul.f32 %v3055_v56, %v1420_v32  ;;  %v1398_v32 = vadd.f32 %v1390_v21, %v1358_v34 }
 0x1c7   : >> { %3388 = vst [vmem:[#allocation19_spill] sm:$0xff] %v3126_v60 }
 0x1c8   : >> { %v1572_v40 = vpop.permute.xlu0 %1571  ;;  %v1440_v10 = vadd.f32 %v1432_v24, %v1400_v59  ;;  %v1441_v50 = vadd.f32 %v1433_v1, %v1401_v29  ;;  %v3129_v24 = vmul.f32 %v3073_v17, %v1536_v33  ;;  %v1438_v29 = vadd.f32 %v1430_v12, %v1398_v32 }
 0x1c9   : >> { %v3023_v63 = vpop.permute.xlu1 %1415  ;;  %v1592_v61 = vmul.f32 %v3076_v53, %v1572_v40  ;;  %v1593_v35 = vmul.f32 %v3079_v62, %v1572_v40  ;;  %v1395_v40 = vmul.f32 %v3049_v23, %v3019_v22  ;;  %v1397_v22 = vmul.f32 %v3049_v23, %v3021_v18 }
 0x1ca   : >> { %3389 = vst [vmem:[#allocation17_spill] sm:$0xff] %v3129_v24  ;;  %v1480_v1 = vadd.f32 %v1472_v57, %v1440_v10  ;;  %v1481_v43 = vadd.f32 %v1473_v42, %v1441_v50  ;;  %v1434_v12 = vmul.f32 %v3052_v46, %v3023_v63  ;;  %v1435_v32 = vmul.f32 %v3055_v56, %v3023_v63 }
 0x1cb   : >> { %v1402_v24 = vadd.f32 %v1394_v16, %v3015_v55  ;;  %v1403_v18 = vadd.f32 %v1395_v40, %v3017_v44  ;;  %v1405_v63 = vadd.f32 %v1397_v22, %v1365_v39 }
 0x1cc   : >> { %v1608_v4 = vpop.permute.xlu0 %1607  ;;  %v1520_v50 = vadd.f32 %v1512_v11, %v1480_v1 }
 0x1cd   : >> { %v3136_v0 = vmul.f32 %v3082_v48, %v1608_v4  ;;  %v3139_v21 = vmul.f32 %v3085_v15, %v1608_v4  ;;  %v1439_v4 = vadd.f32 %v1431_v30, %v1399_v51 }
 0x1ce   : >> { %v3025_v8 = vpop.permute.xlu1 %1447 }
 0x1cf   : >> { %3391 = vst [vmem:[#allocation11_spill] sm:$0xff] %v3139_v21  ;;  %v1470_v59 = vmul.f32 %v3058_v58, %v3025_v8  ;;  %v1471_v33 = vmul.f32 %v3061_v27, %v3025_v8 }
 0x1d0   : >> { %v3131_v41 = vpop.permute.xlu0 %1615 }
 0x1d1   : >> { %3390 = vst [vmem:[#allocation6_spill] sm:$0xff] %v3131_v41  ;;  %v1478_v51 = vadd.f32 %v1470_v59, %v1438_v29  ;;  %v1479_v41 = vadd.f32 %v1471_v33, %v1439_v4 }
 0x1d2   : >> { %v3027_v6 = vpop.permute.xlu1 %1455 }
 0x1d3   : >> { %v1474_v55 = vmul.f32 %v3058_v58, %v3027_v6  ;;  %v1475_v44 = vmul.f32 %v3061_v27, %v3027_v6 }
 0x1d4   : >> { %v1652_v30 = vpop.permute.xlu0 %1651 }
 0x1d5   : >> { %v1672_v1 = vmul.f32 %v3089_v14, %v1652_v30 }
 0x1d7   : >> { %v3029_v37 = vpop.permute.xlu1 %1487 }
 0x1d8   : >> { %v1510_v57 = vmul.f32 %v3064_v38, %v3029_v37  ;;  %v1511_v42 = vmul.f32 %v3067_v31, %v3029_v37  ;;  %v1521_v37 = vadd.f32 %v1513_v49, %v1481_v43  ;;  %v1442_v49 = vadd.f32 %v1434_v12, %v1402_v24 }
 0x1d9   : >> { %v1443_v43 = vadd.f32 %v1435_v32, %v1403_v18 }
 0x1da   : >> { %v1518_v23 = vadd.f32 %v1510_v57, %v1478_v51 }
 0x1dc   : >> { %v3037_v47 = vpop.permute.xlu1 %1459  ;;  %v1558_v24 = vadd.f32 %v1550_v25, %v1518_v23  ;;  %v1660_v23 = vpop.permute.xlu0 %1659 }
 0x1dd   : >> { %v1477_v16 = vmul.f32 %v3061_v27, %v3037_v47  ;;  %v3393_v27 = vld [vmem:[#allocation18_spill] sm:$0xff] }
 0x1e1   : >> { %v3039_v36 = vpop.permute.xlu1 %1495 }
 0x1e2   : >> { %v1514_v40 = vmul.f32 %v3064_v38, %v3039_v36  ;;  %v1515_v29 = vmul.f32 %v3067_v31, %v3039_v36 }
 0x1e6   : >> { %v3041_v45 = vpop.permute.xlu1 %1531 }
 0x1e7   : >> { %v1552_v34 = vmul.f32 %v3070_v9, %v3041_v45  ;;  %v1553_v8 = vmul.f32 %v3073_v17, %v3041_v45  ;;  %v1364_v45 = vadd.f32 %v1356_v7, %v2995_v3 }
 0x1e9   : >> { %v1560_v60 = vadd.f32 %v1552_v34, %v1520_v50  ;;  %v1561_v46 = vadd.f32 %v1553_v8, %v1521_v37  ;;  %v1404_v21 = vadd.f32 %v1396_v28, %v1364_v45 }
 0x1eb   : >> { %v3043_v20 = vpop.permute.xlu1 %1499  ;;  %v1600_v13 = vadd.f32 %v1592_v61, %v1560_v60  ;;  %v1601_v33 = vadd.f32 %v1593_v35, %v1561_v46  ;;  %v1483_v61 = vadd.f32 %v1475_v44, %v1443_v43  ;;  %v1445_v35 = vadd.f32 %v3113_v2, %v1405_v63  ;;  %v3396_v46 = vld [vmem:[#allocation19_spill] sm:$0xff] }
 0x1ec   : >> { %v1516_v60 = vmul.f32 %v3064_v38, %v3043_v20  ;;  %v1517_v36 = vmul.f32 %v3067_v31, %v3043_v20  ;;  %v1677_v44 = vmul.f32 %v3393_v27, %v1660_v23 }
 0x1f0   : >> { %v3095_v19 = vpop.permute.xlu1 %1567 }
 0x1f1   : >> { %v1590_v3 = vmul.f32 %v3076_v53, %v3095_v19  ;;  %v1591_v7 = vmul.f32 %v3079_v62, %v3095_v19  ;;  %v1444_v19 = vadd.f32 %v3110_v5, %v1404_v21  ;;  %v1485_v5 = vadd.f32 %v1477_v16, %v1445_v35 }
 0x1f5   : >> { %v3119_v52 = vpop.permute.xlu1 %1539 }
 0x1f6   : >> { %v1556_v57 = vmul.f32 %v3070_v9, %v3119_v52  ;;  %v1557_v28 = vmul.f32 %v3073_v17, %v3119_v52  ;;  %v1525_v9 = vadd.f32 %v1517_v36, %v1485_v5 }
 0x1f8   : >> { %v1565_v18 = vadd.f32 %v1557_v28, %v1525_v9 }
 0x1fa   : >> { %v3151_v10 = vpop.permute.xlu1 %1575 }
 0x1fb   : >> { %3392 = vst [vmem:[#allocation12_spill] sm:$0xff] %v3151_v10  ;;  %v1519_v10 = vadd.f32 %v1511_v42, %v1479_v41  ;;  %v1476_v41 = vmul.f32 %v3058_v58, %v3037_v47  ;;  %v1598_v58 = vadd.f32 %v1590_v3, %v1558_v24  ;;  %v1523_v42 = vadd.f32 %v1515_v29, %v1483_v61 }
 0x1fd   : >> { %v1559_v59 = vadd.f32 %v1551_v54, %v1519_v10  ;;  %v1482_v54 = vadd.f32 %v1474_v55, %v1442_v49  ;;  %v1673_v10 = vmul.f32 %v3393_v27, %v1652_v30  ;;  %v1484_v4 = vadd.f32 %v1476_v41, %v1444_v19  ;;  %v3394_v30 = vld [vmem:[#allocation11_spill] sm:$0xff]  ;;  %v3398_v41 = vld [vmem:[#allocation6_spill] sm:$0xff] }
 0x1fe   : >> { %v1638_v12 = vadd.f32 %v3136_v0, %v1598_v58  ;;  %v1676_v55 = vmul.f32 %v3089_v14, %v1660_v23  ;;  %v1634_v24 = vmul.f32 %v3082_v48, %v3398_v41  ;;  %v1707_v58 = vpop.permute.xlu0 %1706 }
 0x1ff   : >> { %v1612_v11 = vpop.permute.xlu1 %1611  ;;  %v1599_v47 = vadd.f32 %v1591_v7, %v1559_v59  ;;  %v1522_v21 = vadd.f32 %v1514_v40, %v1482_v54  ;;  %v1524_v8 = vadd.f32 %v1516_v60, %v1484_v4  ;;  %v1635_v59 = vmul.f32 %v3085_v15, %v3398_v41 }
 0x200   : >> { %v1632_v56 = vmul.f32 %v3082_v48, %v1612_v11  ;;  %v1633_v26 = vmul.f32 %v3085_v15, %v1612_v11 }
 0x201   : >> { %v1639_v32 = vadd.f32 %v3394_v30, %v1599_v47  ;;  %v1564_v51 = vadd.f32 %v1556_v57, %v1524_v8  ;;  %v1562_v11 = vadd.f32 %v3396_v46, %v1522_v21 }
 0x202   : >> { %v1640_v6 = vadd.f32 %v1632_v56, %v1600_v13  ;;  %v1641_v25 = vadd.f32 %v1633_v26, %v1601_v33  ;;  %v3395_v37 = vld [vmem:[#allocation12_spill] sm:$0xff] }
 0x203   : >> { %v1594_v45 = vmul.f32 %v3076_v53, %v3395_v37  ;;  %v1595_v52 = vmul.f32 %v3079_v62, %v3395_v37 }
 0x204   : >> { %v1580_v34 = vpop.permute.xlu1 %1579  ;;  %v1680_v38 = vadd.f32 %v1672_v1, %v1640_v6  ;;  %v1681_v22 = vadd.f32 %v1673_v10, %v1641_v25  ;;  %v3397_v1 = vld [vmem:[#allocation17_spill] sm:$0xff] }
 0x205   : >> { %v1596_v50 = vmul.f32 %v3076_v53, %v1580_v34  ;;  %v1597_v39 = vmul.f32 %v3079_v62, %v1580_v34  ;;  %v1563_v63 = vadd.f32 %v3397_v1, %v1523_v42  ;;  %v1602_v62 = vadd.f32 %v1594_v45, %v1562_v11 }
 0x206   : >> { %2054 = vtanh.f32 %v1680_v38 }
 0x207   : >> { %2056 = vtanh.f32 %v1681_v22  ;;  %v1604_v56 = vadd.f32 %v1596_v50, %v1564_v51  ;;  %v1605_v43 = vadd.f32 %v1597_v39, %v1565_v18  ;;  %v1603_v26 = vadd.f32 %v1595_v52, %v1563_v63  ;;  %v1748_v18 = vpop.permute.xlu0 %1747 }
 0x208   : >> { %v1642_v29 = vadd.f32 %v1634_v24, %v1602_v62  ;;  %v2178_v52 = vmov 1966171168  }
 0x209   : >> { %v1648_v2 = vpop.permute.xlu1 %1647  ;;  %v1643_v6 = vadd.f32 %v1635_v59, %v1603_v26 }
 0x20a   : >> { %v1670_v20 = vmul.f32 %v3089_v14, %v1648_v2  ;;  %v1671_v31 = vmul.f32 %v3393_v27, %v1648_v2 }
 0x20c   : >> { %v1678_v17 = vadd.f32 %v1670_v20, %v1638_v12  ;;  %v1679_v0 = vadd.f32 %v1671_v31, %v1639_v32 }
 0x20e   : >> { %2058 = vtanh.f32 %v1678_v17  ;;  %v1620_v49 = vpop.permute.xlu1 %1619  ;;  %v1760_v17 = vunpack.c.l.s4 %v2178_v52 }
 0x20f   : >> { %2060 = vtanh.f32 %v1679_v0  ;;  %v1636_v53 = vmul.f32 %v3082_v48, %v1620_v49  ;;  %v1637_v3 = vmul.f32 %v3085_v15, %v1620_v49 }
 0x210   : >> { %v2055_v60 = vpop.eup %2054  ;;  %v1761_v11 = vunpack.c.0.s8 %v1760_v17 }
 0x211   : >> { %v1644_v7 = vadd.f32 %v1636_v53, %v1604_v56  ;;  %v1645_v13 = vadd.f32 %v1637_v3, %v1605_v43  ;;  %v2057_v61 = vpop.eup %2056  ;;  %v1721_v47 = vmul.f32 %v2055_v60, %v1707_v58  ;;  %v3399_v56 = vld [vmem:[#allocation9_spill] sm:$0xff]  ;;  %v3400_v3 = vld [vmem:[#allocation7_spill] sm:$0xff] }
 0x212   : >> { %v1722_v4 = vmul.f32 %v2057_v61, %v1707_v58  ;;  %v1753_v49 = vrot.slane %v1748_v18, %v3399_v56  ;;  %v1764_v62 = vsub.s32 %v1761_v11, %v3400_v3 }
 0x213   : >> { %v1684_v33 = vadd.f32 %v1676_v55, %v1644_v7  ;;  %v1685_v16 = vadd.f32 %v1677_v44, %v1645_v13  ;;  %v1656_v40 = vpop.permute.xlu1 %1655  ;;  %v3401_v7 = vlaneseq }
 0x214   : >> { %v1674_v34 = vmul.f32 %v3089_v14, %v1656_v40  ;;  %v1675_v19 = vmul.f32 %v3393_v27, %v1656_v40 }
 0x215   : >> { %2062 = vtanh.f32 %v1684_v33  ;;  %vm1777_vm0 = vcmp.lt.s32.totalorder %v3401_v7, 256 }
 0x216   : >> { %v1682_v25 = vadd.f32 %v1674_v34, %v1642_v29  ;;  %v1683_v54 = vadd.f32 %v1675_v19, %v1643_v6  ;;  %2064 = vtanh.f32 %v1685_v16 }
 0x218   : >> { %v2059_v48 = vpop.eup %2058  ;;  %2066 = vtanh.f32 %v1682_v25  ;;  %v1702_v35 = vpop.permute.xlu1 %1701 }
 0x219   : >> { %v2061_v15 = vpop.eup %2060  ;;  %2068 = vtanh.f32 %v1683_v54  ;;  %v1719_v10 = vmul.f32 %v2059_v48, %v1702_v35 }
 0x21a   : >> { %v1720_v36 = vmul.f32 %v2061_v15, %v1702_v35 }
 0x21b   : >> { %v1727_v57 = vadd.f32 %v1721_v47, %v1719_v10 }
 0x21c   : >> { %v1736_v14 = vadd.f32 %v1722_v4, %v1720_v36  ;;  %v1712_v5 = vpop.permute.xlu1 %1711 }
 0x21f   : >> { %v2063_v27 = vpop.eup %2062 }
 0x220   : >> { %v2065_v21 = vpop.eup %2064  ;;  %v1717_v38 = vpop.permute.xlu1 %1716 }
 0x221   : >> { %v1725_v12 = vmul.f32 %v2063_v27, %v1717_v38  ;;  %v1726_v30 = vmul.f32 %v2065_v21, %v1717_v38 }
 0x222   : >> { %v2067_v42 = vpop.eup %2066 }
 0x223   : >> { %v2069_v8 = vpop.eup %2068  ;;  %v1723_v28 = vmul.f32 %v2067_v42, %v1712_v5 }
 0x224   : >> { %v1724_v22 = vmul.f32 %v2069_v8, %v1712_v5 }
 0x225   : >> { %v1728_v2 = vadd.f32 %v1727_v57, %v1723_v28 }
 0x226   : >> { %v1737_v50 = vadd.f32 %v1736_v14, %v1724_v22 }
 0x227   : >> { %v1729_v32 = vadd.f32 %v1728_v2, %v1725_v12 }
 0x228   : >> { %v1738_v20 = vadd.f32 %v1737_v50, %v1726_v30 }
 0x229   : >> { %v1730_v31 = vrot.slane %v1729_v32, 4 }
 0x22a   : >> { %v1739_v9 = vrot.slane %v1738_v20, 4 }
 0x22b   : >> { %v1731_v51 = vadd.f32 %v1730_v31, %v1729_v32 }
 0x22c   : >> { %v1740_v37 = vadd.f32 %v1739_v9, %v1738_v20 }
 0x22d   : >> { %v1732_v45 = vrot.slane %v1731_v51, 2 }
 0x22e   : >> { %v1741_v39 = vrot.slane %v1740_v37, 2 }
 0x22f   : >> { %v1733_v0 = vadd.f32 %v1732_v45, %v1731_v51 }
 0x230   : >> { %v1742_v23 = vadd.f32 %v1741_v39, %v1740_v37 }
 0x231   : >> { %v1734_v46 = vrot.slane %v1733_v0, 1 }
 0x232   : >> { %v1743_v1 = vrot.slane %v1742_v23, 1 }
 0x233   : >> { %v1735_v63 = vadd.f32 %v1734_v46, %v1733_v0 }
 0x234   : >> { %v1744_v43 = vadd.f32 %v1743_v1, %v1742_v23 }
 0x235   : >> { %v1754_v53 = vadd.f32 %v1753_v49, %v1735_v63 }
 0x236   : >> { %v1755_v26 = vadd.f32 %v1753_v49, %v1744_v43 }
 0x238   : >> { %v1758_v55 = vcombine.low %v1754_v53, %v1755_v26  ;;  %286 = sbr.rel (!%p284_p11) target bundleno = 27 (0x1b), region = 92 }
 0x23a   : >> { %v1765_v44 = vrot.slane %v1758_v55, %v1764_v62 }
 0x23c   : >> { %v1772_v13 = vrot.slane %v1765_v44, %v1764_v62 }
 0x23e   : >> { %1779 = vst.msk [vmem:[%s1774_s24] sm:$0x3] %vm1777_vm0, %v1772_v13 }
 0x23f   : > { %2087 = shalt.err (!%p2084_p4)
}
 0x240   : > { %s2088_s14 = scalar_lea.hbm %s3237_s15, 128  ;;  %s2092_s19 = scalar_lea.hbm %s3293_s7, 256 }
 0x241   : > { %p2089_p7 = scmp.ne.s32.totalorder %s3237_s15, %s2088_s14  ;;  %p2093_p10 = scmp.lt.u32.totalorder %s3237_s15, %s3293_s7 }
 0x242   : > { %p2094_p11 = scmp.lt.u32.totalorder %s2092_s19, %s2088_s14  ;;  %p2096_p13 = scmp.lt.u32.totalorder %s2088_s14, %s3237_s15 }
 0x243   : > { %p2090_p8 = pnand %p2089_p7, %p2263_p5 }
 0x244   : > { %p2095_p12 = por %p2094_p11, %p2093_p10 }
 0x245   : > { %p2091_p9 = pneg %p2090_p8 }
 0x246   : > { %p2097_p0 = por %p2096_p13, %p2095_p12 }
 0x248   : > { %p2098_p1 = pnand %p2097_p0, %p2091_p9 }
 0x24a   : > { %2101 = shalt.err (!%p2098_p1)
}
 0x24b   : > { %s2180_s30 = smov 32   ;;  %s2181_s9 = smov 2  }
 0x24c   : > { %1882 = dma.vmem_to_hbm [thread:$0]  (%p2263_p5), %s3241_s25, 128, %s3237_s15, %s3245_s22, %s2180_s30, %s2180_s30, %s2181_s9  }
 0x24d PF: > { %p1888_p2 = scmp.ge.s32.totalorder %s2140_s29, 2  ;;  %s1810_s10 = sand.u32 1, %s2128_s26  }
 0x24e   : > { %s1811_s20 = scalar_lea.sflag [#allocation4], %s1810_s10 }
 0x24f   : > { %p1885_p3 = pnand %p1888_p2, %p2267_p6 }
 0x251   : > { %2123 = dma.done.wait (!%p1885_p3), %s1811_s20, 128  }
 0x252   : > { %2125 = vsyncadd (!%p1885_p3), %s1811_s20, 4294967168  ;;  %p19_p4 = scmp.ge.s32.totalorder %s2250_s8, 4   ;;  %s3402_s26 = smov %s2132_s27 }
 0x253   : > { %s3403_s27 = smov %s2136_s28  ;;  %s3404_s28 = smov %s2261_s11 }
 0x254   : > { %s3405_s29 = smov %s2250_s8  ;;  %21 = sbr.rel (!%p19_p4) target bundleno = 6 (0x6), region = 103 }
 0x25b   :  { %1816 = vsyncpa [#allocation4], 1 }
 0x25c   :  { %1818 = vsyncpa [#allocation4 + $0x1], 1 }

</bundles_post_ra>
